<compile_context>
chip_gen: v6e
topology: v6e:2x2x1
jax: 0.10.0
libtpu: 0.0.40
codegen_flags: <defaults>
</compile_context>

<pallas_src>
import functools

import jax
import jax.numpy as jnp
from jax.experimental import pallas as pl
from jax.experimental.pallas import tpu as pltpu


def _round_up(x, m):
    return (x + m - 1) // m * m


def _lstm_layer_kernel(x_ref, wih_ref, whh_ref, b_ref,
                       y_ref, h_out_ref, c_out_ref,
                       h_sc, c_sc, xg_sc,
                       *, hidden_pad, batch_pad, chunk, seq_len, mask_tail):
    """One LSTM layer, one time-chunk per grid step (sequential grid).

    x_ref  : (Tc*Bp, Ip)   input dtype (f32 or bf16), time-major slab
    wih_ref: (Ip, 4*Hp)    matmul dtype (bf16 or f32), gate-blocked
    whh_ref: (Hp, 4*Hp)    matmul dtype, gate-blocked
    b_ref  : (1, 4*Hp)     f32 (b_ih + b_hh, gate-blocked)
    y_ref  : (Tc*Bp, Hp)   out dtype
    h_out_ref / c_out_ref : (Bp, Hp) f32   (final states)
    """
    c_idx = pl.program_id(0)
    Hp = hidden_pad
    Bp = batch_pad
    Tc = chunk
    mm_dtype = wih_ref.dtype

    @pl.when(c_idx == 0)
    def _init():
        h_sc[...] = jnp.zeros_like(h_sc)
        c_sc[...] = jnp.zeros_like(c_sc)

    # ---- pre-phase: input projection for the WHOLE chunk (one big matmul) ----
    xg = jnp.dot(x_ref[...].astype(mm_dtype), wih_ref[...],
                 preferred_element_type=jnp.float32)
    xg_sc[...] = xg + b_ref[...]                       # (Tc*Bp, 4Hp) f32

    # ---- sequential recurrence over the chunk (static, fully unrolled) ----
    for s in range(Tc):
        h_prev = h_sc[...]
        c_prev = c_sc[...]

        gates = xg_sc[pl.ds(s * Bp, Bp), :] + jnp.dot(
            h_prev.astype(mm_dtype), whh_ref[...],
            preferred_element_type=jnp.float32)

        # PyTorch gate ordering: input, forget, cell(g), output.
        # Hp is a multiple of 128 -> every slice below is lane-aligned.
        i_g = jax.nn.sigmoid(gates[:, 0 * Hp:1 * Hp])
        f_g = jax.nn.sigmoid(gates[:, 1 * Hp:2 * Hp])
        g_g = jnp.tanh(gates[:, 2 * Hp:3 * Hp])
        o_g = jax.nn.sigmoid(gates[:, 3 * Hp:4 * Hp])

        c_new = f_g * c_prev + i_g * g_g
        h_new = o_g * jnp.tanh(c_new)

        if mask_tail:
            # Freeze the state on padded timesteps so the final h/c stay correct.
            valid = (c_idx * Tc + s) < seq_len
            c_new = jnp.where(valid, c_new, c_prev)
            h_new = jnp.where(valid, h_new, h_prev)

        c_sc[...] = c_new
        h_sc[...] = h_new
        y_ref[pl.ds(s * Bp, Bp), :] = h_new.astype(y_ref.dtype)

    @pl.when(c_idx == pl.num_programs(0) - 1)
    def _finalize():
        h_out_ref[...] = h_sc[...]
        c_out_ref[...] = c_sc[...]


def lstm_layer_pallas(x2d, wih_p, whh_p, b_p, *, seq_len, batch_pad,
                      hidden_pad, time_chunk, out_dtype):
    """Run one LSTM layer on a padded time-major slab.

    x2d   : (T_pad*B_pad, I_pad)  f32 or bf16
    wih_p : (I_pad, 4*H_pad)      matmul dtype
    whh_p : (H_pad, 4*H_pad)      matmul dtype
    b_p   : (1, 4*H_pad)          f32
    returns (y (T_pad*B_pad, H_pad), h_final (B_pad,H_pad), c_final (B_pad,H_pad))
    """
    TB, I_pad = x2d.shape
    Bp, Hp, Tc = batch_pad, hidden_pad, time_chunk
    T_pad = TB // Bp
    n_chunks = T_pad // Tc
    mask_tail = (T_pad != seq_len)

    kernel = functools.partial(
        _lstm_layer_kernel, hidden_pad=Hp, batch_pad=Bp, chunk=Tc,
        seq_len=seq_len, mask_tail=mask_tail)

    y, h_f, c_f = pl.pallas_call(
        kernel,
        out_shape=(
            jax.ShapeDtypeStruct((TB, Hp), out_dtype),
            jax.ShapeDtypeStruct((Bp, Hp), jnp.float32),
            jax.ShapeDtypeStruct((Bp, Hp), jnp.float32),
        ),
        grid_spec=pltpu.PrefetchScalarGridSpec(
            num_scalar_prefetch=0,
            grid=(n_chunks,),
            in_specs=[
                pl.BlockSpec((Tc * Bp, I_pad), lambda c: (c, 0)),   # x chunk
                pl.BlockSpec((I_pad, 4 * Hp), lambda c: (0, 0)),    # W_ih^T (resident)
                pl.BlockSpec((Hp, 4 * Hp), lambda c: (0, 0)),       # W_hh^T (resident)
                pl.BlockSpec((1, 4 * Hp), lambda c: (0, 0)),        # bias   (resident)
            ],
            out_specs=[
                pl.BlockSpec((Tc * Bp, Hp), lambda c: (c, 0)),      # y chunk
                pl.BlockSpec((Bp, Hp), lambda c: (0, 0)),           # final hidden
                pl.BlockSpec((Bp, Hp), lambda c: (0, 0)),           # final cell
            ],
            scratch_shapes=[
                pltpu.VMEM((Bp, Hp), jnp.float32),                  # h carry
                pltpu.VMEM((Bp, Hp), jnp.float32),                  # c carry
                pltpu.VMEM((Tc * Bp, 4 * Hp), jnp.float32),         # x-projection
            ],
        ),
        compiler_params=pltpu.CompilerParams(
            dimension_semantics=("arbitrary",)),                    # time is sequential
    )(x2d, wih_p, whh_p, b_p)
    return y, h_f, c_f


def _prep_weights(w_ih, w_hh, b_ih, b_hh, in_pad, hidden, hidden_pad,
                  matmul_dtype):
    """Transpose + zero-pad PyTorch-layout LSTM weights into gate-blocked
    (pad, 4*H_pad) layout.  Padded rows/cols are zero so padded hidden/cell
    entries stay exactly zero."""
    in_sz = w_ih.shape[1]
    H, Hp = hidden, hidden_pad
    wih_t = jnp.asarray(w_ih, jnp.float32).T          # (in, 4H)
    whh_t = jnp.asarray(w_hh, jnp.float32).T          # (H, 4H)
    bias = (b_ih + b_hh).astype(jnp.float32)          # (4H,)

    wih_p = jnp.zeros((in_pad, 4 * Hp), jnp.float32)
    whh_p = jnp.zeros((Hp, 4 * Hp), jnp.float32)
    b_p = jnp.zeros((1, 4 * Hp), jnp.float32)
    for g in range(4):
        wih_p = wih_p.at[:in_sz, g * Hp:g * Hp + H].set(wih_t[:, g * H:(g + 1) * H])
        whh_p = whh_p.at[:H, g * Hp:g * Hp + H].set(whh_t[:, g * H:(g + 1) * H])
        b_p = b_p.at[:, g * Hp:g * Hp + H].set(bias[g * H:(g + 1) * H])
    return wih_p.astype(matmul_dtype), whh_p.astype(matmul_dtype), b_p


def encoder_lstm_forward(x_bti, params, *, matmul_dtype=jnp.bfloat16,
                         time_chunk=None):
    """EncoderLSTM.forward equivalent (eval-mode dropout = identity).

    x_bti  : (B, T, input_size)  -- batch_first, like the PyTorch module
    params : list per layer of (w_ih, w_hh, b_ih, b_hh)  (PyTorch shapes)
    returns (outputs (B,T,H), hidden (L,B,H), cell (L,B,H))
    """
    B, T, I = x_bti.shape
    H = params[0][1].shape[1]
    num_layers = len(params)

    B_pad = _round_up(B, 8)          # sublane alignment
    H_pad = _round_up(H, 128)        # lane alignment -> gate slices lane-aligned
    I_pad = _round_up(I, 128)
    Tc = time_chunk if time_chunk is not None else min(_round_up(T, 8), 16)
    T_pad = _round_up(T, Tc)

    # One-time layout conversion: batch_first -> padded time-major slab.
    x_t = jnp.transpose(x_bti.astype(jnp.float32), (1, 0, 2))     # (T, B, I)
    x_p = jnp.zeros((T_pad, B_pad, I_pad), jnp.float32).at[:T, :B, :I].set(x_t)
    layer_in = x_p.reshape(T_pad * B_pad, I_pad)

    in_pad = I_pad
    h_list, c_list = [], []
    for li, (w_ih, w_hh, b_ih, b_hh) in enumerate(params):
        wih_p, whh_p, b_p = _prep_weights(w_ih, w_hh, b_ih, b_hh,
                                          in_pad, H, H_pad, matmul_dtype)
        last = (li == num_layers - 1)
        out_dtype = jnp.float32 if last else matmul_dtype
        layer_in, h_f, c_f = lstm_layer_pallas(
            layer_in, wih_p, whh_p, b_p,
            seq_len=T, batch_pad=B_pad, hidden_pad=H_pad,
            time_chunk=Tc, out_dtype=out_dtype)
        h_list.append(h_f[:B, :H])
        c_list.append(c_f[:B, :H])
        in_pad = H_pad
        # TODO(synk): inter-layer LSTM dropout omitted (eval-mode identity).

    y = layer_in.reshape(T_pad, B_pad, H_pad)[:T, :B, :H]
    outputs = jnp.transpose(y, (1, 0, 2))                          # (B, T, H)
    hidden = jnp.stack(h_list, axis=0)                             # (L, B, H)
    cell = jnp.stack(c_list, axis=0)                               # (L, B, H)
    # TODO(synk): output nn.Dropout is identity (eval-mode semantics).
    return outputs, hidden, cell


# ---------------- pure-JAX reference (for correctness check) ----------------
def encoder_lstm_ref(x_bti, params):
    B, T, _ = x_bti.shape
    layer_in = x_bti
    hs, cs = [], []
    for (w_ih, w_hh, b_ih, b_hh) in params:
        H = w_hh.shape[1]
        h = jnp.zeros((B, H), jnp.float32)
        c = jnp.zeros((B, H), jnp.float32)
        outs = []
        b = b_ih + b_hh
        for t in range(T):
            gates = layer_in[:, t, :] @ w_ih.T + h @ w_hh.T + b
            i_g = jax.nn.sigmoid(gates[:, 0 * H:1 * H])
            f_g = jax.nn.sigmoid(gates[:, 1 * H:2 * H])
            g_g = jnp.tanh(gates[:, 2 * H:3 * H])
            o_g = jax.nn.sigmoid(gates[:, 3 * H:4 * H])
            c = f_g * c + i_g * g_g
            h = o_g * jnp.tanh(c)
            outs.append(h)
        layer_in = jnp.stack(outs, axis=1)
        hs.append(h)
        cs.append(c)
    return layer_in, jnp.stack(hs), jnp.stack(cs)


def make_params(key, input_size, hidden_size, num_layers):
    """Deterministic init matching nn.LSTM shapes: U(-1/sqrt(H), 1/sqrt(H))."""
    params = []
    bound = 1.0 / (hidden_size ** 0.5)
    for layer in range(num_layers):
        in_sz = input_size if layer == 0 else hidden_size
        key, k0, k1, k2, k3 = jax.random.split(key, 5)
        w_ih = jax.random.uniform(k0, (4 * hidden_size, in_sz),
                                  jnp.float32, -bound, bound)
        w_hh = jax.random.uniform(k1, (4 * hidden_size, hidden_size),
                                  jnp.float32, -bound, bound)
        b_ih = jax.random.uniform(k2, (4 * hidden_size,),
                                  jnp.float32, -bound, bound)
        b_hh = jax.random.uniform(k3, (4 * hidden_size,),
                                  jnp.float32, -bound, bound)
        params.append((w_ih, w_hh, b_ih, b_hh))
    return params


if __name__ == "__main__":
    B, T = 2, 8
    INPUT_SIZE, HIDDEN_SIZE, NUM_LAYERS = 16, 32, 2

    root = jax.random.PRNGKey(0)
    kx, kp = jax.random.split(root)
    x = jax.random.normal(kx, (B, T, INPUT_SIZE), jnp.float32)
    params = make_params(kp, INPUT_SIZE, HIDDEN_SIZE, NUM_LAYERS)

    ref_out, ref_h, ref_c = encoder_lstm_ref(x, params)

    # --- exact-parity mode (f32 matmuls) ---
    out32, hid32, cel32 = encoder_lstm_forward(x, params,
                                               matmul_dtype=jnp.float32)
    jax.block_until_ready((out32, hid32, cel32))
    assert out32.shape == (B, T, HIDDEN_SIZE)
    assert hid32.shape == (NUM_LAYERS, B, HIDDEN_SIZE)
    assert cel32.shape == (NUM_LAYERS, B, HIDDEN_SIZE)
    assert jnp.allclose(out32, ref_out, atol=1e-4, rtol=1e-4)
    assert jnp.allclose(hid32, ref_h, atol=1e-4, rtol=1e-4)
    assert jnp.allclose(cel32, ref_c, atol=1e-4, rtol=1e-4)

    # --- performance mode (bf16 matmul inputs, f32 state/accumulation) ---
    outbf, hidbf, celbf = encoder_lstm_forward(x, params,
                                               matmul_dtype=jnp.bfloat16)
    jax.block_until_ready((outbf, hidbf, celbf))
    assert jnp.allclose(outbf, ref_out, atol=5e-2)
    assert jnp.allclose(hidbf, ref_h, atol=5e-2)
    assert jnp.allclose(celbf, ref_c, atol=5e-2)

    print("KERNEL_OK")
</pallas_src>

<mosaic_0001>
module attributes {stable_mosaic.version = 11 : i64} {
  func.func @_lstm_layer_kernel(%arg0: i32, %arg1: memref<64x128xf32, #tpu.memory_space<vmem>>, %arg2: memref<128x512xf32, #tpu.memory_space<vmem>>, %arg3: memref<128x512xf32, #tpu.memory_space<vmem>>, %arg4: memref<1x512xf32, #tpu.memory_space<vmem>>, %arg5: memref<64x128xf32, #tpu.memory_space<vmem>>, %arg6: memref<8x128xf32, #tpu.memory_space<vmem>>, %arg7: memref<8x128xf32, #tpu.memory_space<vmem>>, %arg8: memref<8x128xf32, #tpu.memory_space<vmem>>, %arg9: memref<8x128xf32, #tpu.memory_space<vmem>>, %arg10: memref<64x512xf32, #tpu.memory_space<vmem>>) attributes {dimension_semantics = [#tpu.dimension_semantics<arbitrary>], iteration_bounds = array<i64: 1>, scalar_prefetch = 0 : i64, scratch_operands = 3 : i64, tpu.core_type = #tpu.core_type<tc>, window_params = [{transform_indices = @transform_0, window_bounds = array<i64: 64, 128>}, {pipeline_mode = #tpu.pipeline_mode<synchronous>, transform_indices = @transform_1, window_bounds = array<i64: 128, 512>}, {pipeline_mode = #tpu.pipeline_mode<synchronous>, transform_indices = @transform_2, window_bounds = array<i64: 128, 512>}, {pipeline_mode = #tpu.pipeline_mode<synchronous>, transform_indices = @transform_3, window_bounds = array<i64: 1, 512>}, {transform_indices = @transform_4, window_bounds = array<i64: 64, 128>}, {pipeline_mode = #tpu.pipeline_mode<synchronous>, transform_indices = @transform_5, window_bounds = array<i64: 8, 128>}, {pipeline_mode = #tpu.pipeline_mode<synchronous>, transform_indices = @transform_6, window_bounds = array<i64: 8, 128>}]} {
    %c0_i32 = arith.constant 0 : i32
    %0 = arith.cmpi eq, %arg0, %c0_i32 : i32
    %1 = arith.extui %0 : i1 to i32
    %c0_i32_0 = arith.constant 0 : i32
    %2 = arith.cmpi ne, %1, %c0_i32_0 : i32
    scf.if %2 {
      %cst_147 = arith.constant 0.000000e+00 : f32
      %285 = vector.broadcast %cst_147 : f32 to vector<8x128xf32>
      %c0_148 = arith.constant 0 : index
      %c0_149 = arith.constant 0 : index
      %286 = vector.load %arg8[%c0_148, %c0_149] : memref<8x128xf32, #tpu.memory_space<vmem>>, vector<8x128xf32>
      tpu.vector_store %arg8[%c0_148, %c0_149], %285 {strides = array<i32>} : memref<8x128xf32, #tpu.memory_space<vmem>>, vector<8x128xf32>,
      %cst_150 = arith.constant 0.000000e+00 : f32
      %287 = vector.broadcast %cst_150 : f32 to vector<8x128xf32>
      %c0_151 = arith.constant 0 : index
      %c0_152 = arith.constant 0 : index
      %288 = vector.load %arg9[%c0_151, %c0_152] : memref<8x128xf32, #tpu.memory_space<vmem>>, vector<8x128xf32>
      tpu.vector_store %arg9[%c0_151, %c0_152], %287 {strides = array<i32>} : memref<8x128xf32, #tpu.memory_space<vmem>>, vector<8x128xf32>,
    } else {
    }
    %c0 = arith.constant 0 : index
    %c0_1 = arith.constant 0 : index
    %3 = vector.load %arg1[%c0, %c0_1] : memref<64x128xf32, #tpu.memory_space<vmem>>, vector<64x128xf32>
    %c0_2 = arith.constant 0 : index
    %c0_3 = arith.constant 0 : index
    %4 = vector.load %arg2[%c0_2, %c0_3] : memref<128x512xf32, #tpu.memory_space<vmem>>, vector<128x512xf32>
    %cst = arith.constant dense<0.000000e+00> : vector<64x512xf32>
    %5 = tpu.matmul %3, %4, %cst {dimension_numbers = #tpu.dot_dimension_numbers<[1], [0], [0], [1], [0, 0, 1, 1], [], []>} : vector<64x128xf32>, vector<128x512xf32>, vector<64x512xf32> -> vector<64x512xf32>
    %c0_4 = arith.constant 0 : index
    %c0_5 = arith.constant 0 : index
    %6 = vector.load %arg4[%c0_4, %c0_5] : memref<1x512xf32, #tpu.memory_space<vmem>>, vector<1x512xf32>
    %7 = vector.broadcast %6 : vector<1x512xf32> to vector<64x512xf32>
    %8 = arith.addf %5, %7 : vector<64x512xf32>
    %c0_6 = arith.constant 0 : index
    %c0_7 = arith.constant 0 : index
    %9 = vector.load %arg10[%c0_6, %c0_7] : memref<64x512xf32, #tpu.memory_space<vmem>>, vector<64x512xf32>
    tpu.vector_store %arg10[%c0_6, %c0_7], %8 {strides = array<i32>} : memref<64x512xf32, #tpu.memory_space<vmem>>, vector<64x512xf32>,
    %c0_8 = arith.constant 0 : index
    %c0_9 = arith.constant 0 : index
    %10 = vector.load %arg8[%c0_8, %c0_9] : memref<8x128xf32, #tpu.memory_space<vmem>>, vector<8x128xf32>
    %c0_10 = arith.constant 0 : index
    %c0_11 = arith.constant 0 : index
    %11 = vector.load %arg9[%c0_10, %c0_11] : memref<8x128xf32, #tpu.memory_space<vmem>>, vector<8x128xf32>
    %c0_12 = arith.constant 0 : index
    %c0_13 = arith.constant 0 : index
    %12 = vector.load %arg10[%c0_12, %c0_13] : memref<64x512xf32, #tpu.memory_space<vmem>>, vector<8x512xf32>
    %c0_14 = arith.constant 0 : index
    %c0_15 = arith.constant 0 : index
    %13 = vector.load %arg3[%c0_14, %c0_15] : memref<128x512xf32, #tpu.memory_space<vmem>>, vector<128x512xf32>
    %cst_16 = arith.constant dense<0.000000e+00> : vector<8x512xf32>
    %14 = tpu.matmul %10, %13, %cst_16 {dimension_numbers = #tpu.dot_dimension_numbers<[1], [0], [0], [1], [0, 0, 1, 1], [], []>} : vector<8x128xf32>, vector<128x512xf32>, vector<8x512xf32> -> vector<8x512xf32>
    %15 = arith.addf %12, %14 : vector<8x512xf32>
    %16 = vector.extract_strided_slice %15 {offsets = [0, 0], sizes = [8, 128], strides = [1, 1]} : vector<8x512xf32> to vector<8x128xf32>
    %17 = arith.negf %16 : vector<8x128xf32>
    %18 = math.exp %17 : vector<8x128xf32>
    %cst_17 = arith.constant 1.000000e+00 : f32
    %19 = vector.broadcast %cst_17 : f32 to vector<8x128xf32>
    %20 = arith.addf %19, %18 : vector<8x128xf32>
    %21 = arith.divf %19, %20 : vector<8x128xf32>
    %22 = vector.extract_strided_slice %15 {offsets = [0, 128], sizes = [8, 128], strides = [1, 1]} : vector<8x512xf32> to vector<8x128xf32>
    %23 = arith.negf %22 : vector<8x128xf32>
    %24 = math.exp %23 : vector<8x128xf32>
    %cst_18 = arith.constant 1.000000e+00 : f32
    %25 = vector.broadcast %cst_18 : f32 to vector<8x128xf32>
    %26 = arith.addf %25, %24 : vector<8x128xf32>
    %27 = arith.divf %25, %26 : vector<8x128xf32>
    %28 = vector.extract_strided_slice %15 {offsets = [0, 256], sizes = [8, 128], strides = [1, 1]} : vector<8x512xf32> to vector<8x128xf32>
    %29 = math.tanh %28 : vector<8x128xf32>
    %30 = vector.extract_strided_slice %15 {offsets = [0, 384], sizes = [8, 128], strides = [1, 1]} : vector<8x512xf32> to vector<8x128xf32>
    %31 = arith.negf %30 : vector<8x128xf32>
    %32 = math.exp %31 : vector<8x128xf32>
    %cst_19 = arith.constant 1.000000e+00 : f32
    %33 = vector.broadcast %cst_19 : f32 to vector<8x128xf32>
    %34 = arith.addf %33, %32 : vector<8x128xf32>
    %35 = arith.divf %33, %34 : vector<8x128xf32>
    %36 = arith.mulf %27, %11 : vector<8x128xf32>
    %37 = arith.mulf %21, %29 : vector<8x128xf32>
    %38 = arith.addf %36, %37 : vector<8x128xf32>
    %39 = math.tanh %38 : vector<8x128xf32>
    %40 = arith.mulf %35, %39 : vector<8x128xf32>
    %c0_20 = arith.constant 0 : index
    %c0_21 = arith.constant 0 : index
    %41 = vector.load %arg9[%c0_20, %c0_21] : memref<8x128xf32, #tpu.memory_space<vmem>>, vector<8x128xf32>
    tpu.vector_store %arg9[%c0_20, %c0_21], %38 {strides = array<i32>} : memref<8x128xf32, #tpu.memory_space<vmem>>, vector<8x128xf32>,
    %c0_22 = arith.constant 0 : index
    %c0_23 = arith.constant 0 : index
    %42 = vector.load %arg8[%c0_22, %c0_23] : memref<8x128xf32, #tpu.memory_space<vmem>>, vector<8x128xf32>
    tpu.vector_store %arg8[%c0_22, %c0_23], %40 {strides = array<i32>} : memref<8x128xf32, #tpu.memory_space<vmem>>, vector<8x128xf32>,
    %c0_24 = arith.constant 0 : index
    %c0_25 = arith.constant 0 : index
    %43 = vector.load %arg5[%c0_24, %c0_25] : memref<64x128xf32, #tpu.memory_space<vmem>>, vector<8x128xf32>
    tpu.vector_store %arg5[%c0_24, %c0_25], %40 {strides = array<i32>} : memref<64x128xf32, #tpu.memory_space<vmem>>, vector<8x128xf32>,
    %c0_26 = arith.constant 0 : index
    %c0_27 = arith.constant 0 : index
    %44 = vector.load %arg8[%c0_26, %c0_27] : memref<8x128xf32, #tpu.memory_space<vmem>>, vector<8x128xf32>
    %c0_28 = arith.constant 0 : index
    %c0_29 = arith.constant 0 : index
    %45 = vector.load %arg9[%c0_28, %c0_29] : memref<8x128xf32, #tpu.memory_space<vmem>>, vector<8x128xf32>
    %c8 = arith.constant 8 : index
    %c0_30 = arith.constant 0 : index
    %46 = vector.load %arg10[%c8, %c0_30] : memref<64x512xf32, #tpu.memory_space<vmem>>, vector<8x512xf32>
    %c0_31 = arith.constant 0 : index
    %c0_32 = arith.constant 0 : index
    %47 = vector.load %arg3[%c0_31, %c0_32] : memref<128x512xf32, #tpu.memory_space<vmem>>, vector<128x512xf32>
    %cst_33 = arith.constant dense<0.000000e+00> : vector<8x512xf32>
    %48 = tpu.matmul %44, %47, %cst_33 {dimension_numbers = #tpu.dot_dimension_numbers<[1], [0], [0], [1], [0, 0, 1, 1], [], []>} : vector<8x128xf32>, vector<128x512xf32>, vector<8x512xf32> -> vector<8x512xf32>
    %49 = arith.addf %46, %48 : vector<8x512xf32>
    %50 = vector.extract_strided_slice %49 {offsets = [0, 0], sizes = [8, 128], strides = [1, 1]} : vector<8x512xf32> to vector<8x128xf32>
    %51 = arith.negf %50 : vector<8x128xf32>
    %52 = math.exp %51 : vector<8x128xf32>
    %cst_34 = arith.constant 1.000000e+00 : f32
    %53 = vector.broadcast %cst_34 : f32 to vector<8x128xf32>
    %54 = arith.addf %53, %52 : vector<8x128xf32>
    %55 = arith.divf %53, %54 : vector<8x128xf32>
    %56 = vector.extract_strided_slice %49 {offsets = [0, 128], sizes = [8, 128], strides = [1, 1]} : vector<8x512xf32> to vector<8x128xf32>
    %57 = arith.negf %56 : vector<8x128xf32>
    %58 = math.exp %57 : vector<8x128xf32>
    %cst_35 = arith.constant 1.000000e+00 : f32
    %59 = vector.broadcast %cst_35 : f32 to vector<8x128xf32>
    %60 = arith.addf %59, %58 : vector<8x128xf32>
    %61 = arith.divf %59, %60 : vector<8x128xf32>
    %62 = vector.extract_strided_slice %49 {offsets = [0, 256], sizes = [8, 128], strides = [1, 1]} : vector<8x512xf32> to vector<8x128xf32>
    %63 = math.tanh %62 : vector<8x128xf32>
    %64 = vector.extract_strided_slice %49 {offsets = [0, 384], sizes = [8, 128], strides = [1, 1]} : vector<8x512xf32> to vector<8x128xf32>
    %65 = arith.negf %64 : vector<8x128xf32>
    %66 = math.exp %65 : vector<8x128xf32>
    %cst_36 = arith.constant 1.000000e+00 : f32
    %67 = vector.broadcast %cst_36 : f32 to vector<8x128xf32>
    %68 = arith.addf %67, %66 : vector<8x128xf32>
    %69 = arith.divf %67, %68 : vector<8x128xf32>
    %70 = arith.mulf %61, %45 : vector<8x128xf32>
    %71 = arith.mulf %55, %63 : vector<8x128xf32>
    %72 = arith.addf %70, %71 : vector<8x128xf32>
    %73 = math.tanh %72 : vector<8x128xf32>
    %74 = arith.mulf %69, %73 : vector<8x128xf32>
    %c0_37 = arith.constant 0 : index
    %c0_38 = arith.constant 0 : index
    %75 = vector.load %arg9[%c0_37, %c0_38] : memref<8x128xf32, #tpu.memory_space<vmem>>, vector<8x128xf32>
    tpu.vector_store %arg9[%c0_37, %c0_38], %72 {strides = array<i32>} : memref<8x128xf32, #tpu.memory_space<vmem>>, vector<8x128xf32>,
    %c0_39 = arith.constant 0 : index
    %c0_40 = arith.constant 0 : index
    %76 = vector.load %arg8[%c0_39, %c0_40] : memref<8x128xf32, #tpu.memory_space<vmem>>, vector<8x128xf32>
    tpu.vector_store %arg8[%c0_39, %c0_40], %74 {strides = array<i32>} : memref<8x128xf32, #tpu.memory_space<vmem>>, vector<8x128xf32>,
    %c8_41 = arith.constant 8 : index
    %c0_42 = arith.constant 0 : index
    %77 = vector.load %arg5[%c8_41, %c0_42] : memref<64x128xf32, #tpu.memory_space<vmem>>, vector<8x128xf32>
    tpu.vector_store %arg5[%c8_41, %c0_42], %74 {strides = array<i32>} : memref<64x128xf32, #tpu.memory_space<vmem>>, vector<8x128xf32>,
    %c0_43 = arith.constant 0 : index
    %c0_44 = arith.constant 0 : index
    %78 = vector.load %arg8[%c0_43, %c0_44] : memref<8x128xf32, #tpu.memory_space<vmem>>, vector<8x128xf32>
    %c0_45 = arith.constant 0 : index
    %c0_46 = arith.constant 0 : index
    %79 = vector.load %arg9[%c0_45, %c0_46] : memref<8x128xf32, #tpu.memory_space<vmem>>, vector<8x128xf32>
    %c16 = arith.constant 16 : index
    %c0_47 = arith.constant 0 : index
    %80 = vector.load %arg10[%c16, %c0_47] : memref<64x512xf32, #tpu.memory_space<vmem>>, vector<8x512xf32>
    %c0_48 = arith.constant 0 : index
    %c0_49 = arith.constant 0 : index
    %81 = vector.load %arg3[%c0_48, %c0_49] : memref<128x512xf32, #tpu.memory_space<vmem>>, vector<128x512xf32>
    %cst_50 = arith.constant dense<0.000000e+00> : vector<8x512xf32>
    %82 = tpu.matmul %78, %81, %cst_50 {dimension_numbers = #tpu.dot_dimension_numbers<[1], [0], [0], [1], [0, 0, 1, 1], [], []>} : vector<8x128xf32>, vector<128x512xf32>, vector<8x512xf32> -> vector<8x512xf32>
    %83 = arith.addf %80, %82 : vector<8x512xf32>
    %84 = vector.extract_strided_slice %83 {offsets = [0, 0], sizes = [8, 128], strides = [1, 1]} : vector<8x512xf32> to vector<8x128xf32>
    %85 = arith.negf %84 : vector<8x128xf32>
    %86 = math.exp %85 : vector<8x128xf32>
    %cst_51 = arith.constant 1.000000e+00 : f32
    %87 = vector.broadcast %cst_51 : f32 to vector<8x128xf32>
    %88 = arith.addf %87, %86 : vector<8x128xf32>
    %89 = arith.divf %87, %88 : vector<8x128xf32>
    %90 = vector.extract_strided_slice %83 {offsets = [0, 128], sizes = [8, 128], strides = [1, 1]} : vector<8x512xf32> to vector<8x128xf32>
    %91 = arith.negf %90 : vector<8x128xf32>
    %92 = math.exp %91 : vector<8x128xf32>
    %cst_52 = arith.constant 1.000000e+00 : f32
    %93 = vector.broadcast %cst_52 : f32 to vector<8x128xf32>
    %94 = arith.addf %93, %92 : vector<8x128xf32>
    %95 = arith.divf %93, %94 : vector<8x128xf32>
    %96 = vector.extract_strided_slice %83 {offsets = [0, 256], sizes = [8, 128], strides = [1, 1]} : vector<8x512xf32> to vector<8x128xf32>
    %97 = math.tanh %96 : vector<8x128xf32>
    %98 = vector.extract_strided_slice %83 {offsets = [0, 384], sizes = [8, 128], strides = [1, 1]} : vector<8x512xf32> to vector<8x128xf32>
    %99 = arith.negf %98 : vector<8x128xf32>
    %100 = math.exp %99 : vector<8x128xf32>
    %cst_53 = arith.constant 1.000000e+00 : f32
    %101 = vector.broadcast %cst_53 : f32 to vector<8x128xf32>
    %102 = arith.addf %101, %100 : vector<8x128xf32>
    %103 = arith.divf %101, %102 : vector<8x128xf32>
    %104 = arith.mulf %95, %79 : vector<8x128xf32>
    %105 = arith.mulf %89, %97 : vector<8x128xf32>
    %106 = arith.addf %104, %105 : vector<8x128xf32>
    %107 = math.tanh %106 : vector<8x128xf32>
    %108 = arith.mulf %103, %107 : vector<8x128xf32>
    %c0_54 = arith.constant 0 : index
    %c0_55 = arith.constant 0 : index
    %109 = vector.load %arg9[%c0_54, %c0_55] : memref<8x128xf32, #tpu.memory_space<vmem>>, vector<8x128xf32>
    tpu.vector_store %arg9[%c0_54, %c0_55], %106 {strides = array<i32>} : memref<8x128xf32, #tpu.memory_space<vmem>>, vector<8x128xf32>,
    %c0_56 = arith.constant 0 : index
    %c0_57 = arith.constant 0 : index
    %110 = vector.load %arg8[%c0_56, %c0_57] : memref<8x128xf32, #tpu.memory_space<vmem>>, vector<8x128xf32>
    tpu.vector_store %arg8[%c0_56, %c0_57], %108 {strides = array<i32>} : memref<8x128xf32, #tpu.memory_space<vmem>>, vector<8x128xf32>,
    %c16_58 = arith.constant 16 : index
    %c0_59 = arith.constant 0 : index
    %111 = vector.load %arg5[%c16_58, %c0_59] : memref<64x128xf32, #tpu.memory_space<vmem>>, vector<8x128xf32>
    tpu.vector_store %arg5[%c16_58, %c0_59], %108 {strides = array<i32>} : memref<64x128xf32, #tpu.memory_space<vmem>>, vector<8x128xf32>,
    %c0_60 = arith.constant 0 : index
    %c0_61 = arith.constant 0 : index
    %112 = vector.load %arg8[%c0_60, %c0_61] : memref<8x128xf32, #tpu.memory_space<vmem>>, vector<8x128xf32>
    %c0_62 = arith.constant 0 : index
    %c0_63 = arith.constant 0 : index
    %113 = vector.load %arg9[%c0_62, %c0_63] : memref<8x128xf32, #tpu.memory_space<vmem>>, vector<8x128xf32>
    %c24 = arith.constant 24 : index
    %c0_64 = arith.constant 0 : index
    %114 = vector.load %arg10[%c24, %c0_64] : memref<64x512xf32, #tpu.memory_space<vmem>>, vector<8x512xf32>
    %c0_65 = arith.constant 0 : index
    %c0_66 = arith.constant 0 : index
    %115 = vector.load %arg3[%c0_65, %c0_66] : memref<128x512xf32, #tpu.memory_space<vmem>>, vector<128x512xf32>
    %cst_67 = arith.constant dense<0.000000e+00> : vector<8x512xf32>
    %116 = tpu.matmul %112, %115, %cst_67 {dimension_numbers = #tpu.dot_dimension_numbers<[1], [0], [0], [1], [0, 0, 1, 1], [], []>} : vector<8x128xf32>, vector<128x512xf32>, vector<8x512xf32> -> vector<8x512xf32>
    %117 = arith.addf %114, %116 : vector<8x512xf32>
    %118 = vector.extract_strided_slice %117 {offsets = [0, 0], sizes = [8, 128], strides = [1, 1]} : vector<8x512xf32> to vector<8x128xf32>
    %119 = arith.negf %118 : vector<8x128xf32>
    %120 = math.exp %119 : vector<8x128xf32>
    %cst_68 = arith.constant 1.000000e+00 : f32
    %121 = vector.broadcast %cst_68 : f32 to vector<8x128xf32>
    %122 = arith.addf %121, %120 : vector<8x128xf32>
    %123 = arith.divf %121, %122 : vector<8x128xf32>
    %124 = vector.extract_strided_slice %117 {offsets = [0, 128], sizes = [8, 128], strides = [1, 1]} : vector<8x512xf32> to vector<8x128xf32>
    %125 = arith.negf %124 : vector<8x128xf32>
    %126 = math.exp %125 : vector<8x128xf32>
    %cst_69 = arith.constant 1.000000e+00 : f32
    %127 = vector.broadcast %cst_69 : f32 to vector<8x128xf32>
    %128 = arith.addf %127, %126 : vector<8x128xf32>
    %129 = arith.divf %127, %128 : vector<8x128xf32>
    %130 = vector.extract_strided_slice %117 {offsets = [0, 256], sizes = [8, 128], strides = [1, 1]} : vector<8x512xf32> to vector<8x128xf32>
    %131 = math.tanh %130 : vector<8x128xf32>
    %132 = vector.extract_strided_slice %117 {offsets = [0, 384], sizes = [8, 128], strides = [1, 1]} : vector<8x512xf32> to vector<8x128xf32>
    %133 = arith.negf %132 : vector<8x128xf32>
    %134 = math.exp %133 : vector<8x128xf32>
    %cst_70 = arith.constant 1.000000e+00 : f32
    %135 = vector.broadcast %cst_70 : f32 to vector<8x128xf32>
    %136 = arith.addf %135, %134 : vector<8x128xf32>
    %137 = arith.divf %135, %136 : vector<8x128xf32>
    %138 = arith.mulf %129, %113 : vector<8x128xf32>
    %139 = arith.mulf %123, %131 : vector<8x128xf32>
    %140 = arith.addf %138, %139 : vector<8x128xf32>
    %141 = math.tanh %140 : vector<8x128xf32>
    %142 = arith.mulf %137, %141 : vector<8x128xf32>
    %c0_71 = arith.constant 0 : index
    %c0_72 = arith.constant 0 : index
    %143 = vector.load %arg9[%c0_71, %c0_72] : memref<8x128xf32, #tpu.memory_space<vmem>>, vector<8x128xf32>
    tpu.vector_store %arg9[%c0_71, %c0_72], %140 {strides = array<i32>} : memref<8x128xf32, #tpu.memory_space<vmem>>, vector<8x128xf32>,
    %c0_73 = arith.constant 0 : index
    %c0_74 = arith.constant 0 : index
    %144 = vector.load %arg8[%c0_73, %c0_74] : memref<8x128xf32, #tpu.memory_space<vmem>>, vector<8x128xf32>
    tpu.vector_store %arg8[%c0_73, %c0_74], %142 {strides = array<i32>} : memref<8x128xf32, #tpu.memory_space<vmem>>, vector<8x128xf32>,
    %c24_75 = arith.constant 24 : index
    %c0_76 = arith.constant 0 : index
    %145 = vector.load %arg5[%c24_75, %c0_76] : memref<64x128xf32, #tpu.memory_space<vmem>>, vector<8x128xf32>
    tpu.vector_store %arg5[%c24_75, %c0_76], %142 {strides = array<i32>} : memref<64x128xf32, #tpu.memory_space<vmem>>, vector<8x128xf32>,
    %c0_77 = arith.constant 0 : index
    %c0_78 = arith.constant 0 : index
    %146 = vector.load %arg8[%c0_77, %c0_78] : memref<8x128xf32, #tpu.memory_space<vmem>>, vector<8x128xf32>
    %c0_79 = arith.constant 0 : index
    %c0_80 = arith.constant 0 : index
    %147 = vector.load %arg9[%c0_79, %c0_80] : memref<8x128xf32, #tpu.memory_space<vmem>>, vector<8x128xf32>
    %c32 = arith.constant 32 : index
    %c0_81 = arith.constant 0 : index
    %148 = vector.load %arg10[%c32, %c0_81] : memref<64x512xf32, #tpu.memory_space<vmem>>, vector<8x512xf32>
    %c0_82 = arith.constant 0 : index
    %c0_83 = arith.constant 0 : index
    %149 = vector.load %arg3[%c0_82, %c0_83] : memref<128x512xf32, #tpu.memory_space<vmem>>, vector<128x512xf32>
    %cst_84 = arith.constant dense<0.000000e+00> : vector<8x512xf32>
    %150 = tpu.matmul %146, %149, %cst_84 {dimension_numbers = #tpu.dot_dimension_numbers<[1], [0], [0], [1], [0, 0, 1, 1], [], []>} : vector<8x128xf32>, vector<128x512xf32>, vector<8x512xf32> -> vector<8x512xf32>
    %151 = arith.addf %148, %150 : vector<8x512xf32>
    %152 = vector.extract_strided_slice %151 {offsets = [0, 0], sizes = [8, 128], strides = [1, 1]} : vector<8x512xf32> to vector<8x128xf32>
    %153 = arith.negf %152 : vector<8x128xf32>
    %154 = math.exp %153 : vector<8x128xf32>
    %cst_85 = arith.constant 1.000000e+00 : f32
    %155 = vector.broadcast %cst_85 : f32 to vector<8x128xf32>
    %156 = arith.addf %155, %154 : vector<8x128xf32>
    %157 = arith.divf %155, %156 : vector<8x128xf32>
    %158 = vector.extract_strided_slice %151 {offsets = [0, 128], sizes = [8, 128], strides = [1, 1]} : vector<8x512xf32> to vector<8x128xf32>
    %159 = arith.negf %158 : vector<8x128xf32>
    %160 = math.exp %159 : vector<8x128xf32>
    %cst_86 = arith.constant 1.000000e+00 : f32
    %161 = vector.broadcast %cst_86 : f32 to vector<8x128xf32>
    %162 = arith.addf %161, %160 : vector<8x128xf32>
    %163 = arith.divf %161, %162 : vector<8x128xf32>
    %164 = vector.extract_strided_slice %151 {offsets = [0, 256], sizes = [8, 128], strides = [1, 1]} : vector<8x512xf32> to vector<8x128xf32>
    %165 = math.tanh %164 : vector<8x128xf32>
    %166 = vector.extract_strided_slice %151 {offsets = [0, 384], sizes = [8, 128], strides = [1, 1]} : vector<8x512xf32> to vector<8x128xf32>
    %167 = arith.negf %166 : vector<8x128xf32>
    %168 = math.exp %167 : vector<8x128xf32>
    %cst_87 = arith.constant 1.000000e+00 : f32
    %169 = vector.broadcast %cst_87 : f32 to vector<8x128xf32>
    %170 = arith.addf %169, %168 : vector<8x128xf32>
    %171 = arith.divf %169, %170 : vector<8x128xf32>
    %172 = arith.mulf %163, %147 : vector<8x128xf32>
    %173 = arith.mulf %157, %165 : vector<8x128xf32>
    %174 = arith.addf %172, %173 : vector<8x128xf32>
    %175 = math.tanh %174 : vector<8x128xf32>
    %176 = arith.mulf %171, %175 : vector<8x128xf32>
    %c0_88 = arith.constant 0 : index
    %c0_89 = arith.constant 0 : index
    %177 = vector.load %arg9[%c0_88, %c0_89] : memref<8x128xf32, #tpu.memory_space<vmem>>, vector<8x128xf32>
    tpu.vector_store %arg9[%c0_88, %c0_89], %174 {strides = array<i32>} : memref<8x128xf32, #tpu.memory_space<vmem>>, vector<8x128xf32>,
    %c0_90 = arith.constant 0 : index
    %c0_91 = arith.constant 0 : index
    %178 = vector.load %arg8[%c0_90, %c0_91] : memref<8x128xf32, #tpu.memory_space<vmem>>, vector<8x128xf32>
    tpu.vector_store %arg8[%c0_90, %c0_91], %176 {strides = array<i32>} : memref<8x128xf32, #tpu.memory_space<vmem>>, vector<8x128xf32>,
    %c32_92 = arith.constant 32 : index
    %c0_93 = arith.constant 0 : index
    %179 = vector.load %arg5[%c32_92, %c0_93] : memref<64x128xf32, #tpu.memory_space<vmem>>, vector<8x128xf32>
    tpu.vector_store %arg5[%c32_92, %c0_93], %176 {strides = array<i32>} : memref<64x128xf32, #tpu.memory_space<vmem>>, vector<8x128xf32>,
    %c0_94 = arith.constant 0 : index
    %c0_95 = arith.constant 0 : index
    %180 = vector.load %arg8[%c0_94, %c0_95] : memref<8x128xf32, #tpu.memory_space<vmem>>, vector<8x128xf32>
    %c0_96 = arith.constant 0 : index
    %c0_97 = arith.constant 0 : index
    %181 = vector.load %arg9[%c0_96, %c0_97] : memref<8x128xf32, #tpu.memory_space<vmem>>, vector<8x128xf32>
    %c40 = arith.constant 40 : index
    %c0_98 = arith.constant 0 : index
    %182 = vector.load %arg10[%c40, %c0_98] : memref<64x512xf32, #tpu.memory_space<vmem>>, vector<8x512xf32>
    %c0_99 = arith.constant 0 : index
    %c0_100 = arith.constant 0 : index
    %183 = vector.load %arg3[%c0_99, %c0_100] : memref<128x512xf32, #tpu.memory_space<vmem>>, vector<128x512xf32>
    %cst_101 = arith.constant dense<0.000000e+00> : vector<8x512xf32>
    %184 = tpu.matmul %180, %183, %cst_101 {dimension_numbers = #tpu.dot_dimension_numbers<[1], [0], [0], [1], [0, 0, 1, 1], [], []>} : vector<8x128xf32>, vector<128x512xf32>, vector<8x512xf32> -> vector<8x512xf32>
    %185 = arith.addf %182, %184 : vector<8x512xf32>
    %186 = vector.extract_strided_slice %185 {offsets = [0, 0], sizes = [8, 128], strides = [1, 1]} : vector<8x512xf32> to vector<8x128xf32>
    %187 = arith.negf %186 : vector<8x128xf32>
    %188 = math.exp %187 : vector<8x128xf32>
    %cst_102 = arith.constant 1.000000e+00 : f32
    %189 = vector.broadcast %cst_102 : f32 to vector<8x128xf32>
    %190 = arith.addf %189, %188 : vector<8x128xf32>
    %191 = arith.divf %189, %190 : vector<8x128xf32>
    %192 = vector.extract_strided_slice %185 {offsets = [0, 128], sizes = [8, 128], strides = [1, 1]} : vector<8x512xf32> to vector<8x128xf32>
    %193 = arith.negf %192 : vector<8x128xf32>
    %194 = math.exp %193 : vector<8x128xf32>
    %cst_103 = arith.constant 1.000000e+00 : f32
    %195 = vector.broadcast %cst_103 : f32 to vector<8x128xf32>
    %196 = arith.addf %195, %194 : vector<8x128xf32>
    %197 = arith.divf %195, %196 : vector<8x128xf32>
    %198 = vector.extract_strided_slice %185 {offsets = [0, 256], sizes = [8, 128], strides = [1, 1]} : vector<8x512xf32> to vector<8x128xf32>
    %199 = math.tanh %198 : vector<8x128xf32>
    %200 = vector.extract_strided_slice %185 {offsets = [0, 384], sizes = [8, 128], strides = [1, 1]} : vector<8x512xf32> to vector<8x128xf32>
    %201 = arith.negf %200 : vector<8x128xf32>
    %202 = math.exp %201 : vector<8x128xf32>
    %cst_104 = arith.constant 1.000000e+00 : f32
    %203 = vector.broadcast %cst_104 : f32 to vector<8x128xf32>
    %204 = arith.addf %203, %202 : vector<8x128xf32>
    %205 = arith.divf %203, %204 : vector<8x128xf32>
    %206 = arith.mulf %197, %181 : vector<8x128xf32>
    %207 = arith.mulf %191, %199 : vector<8x128xf32>
    %208 = arith.addf %206, %207 : vector<8x128xf32>
    %209 = math.tanh %208 : vector<8x128xf32>
    %210 = arith.mulf %205, %209 : vector<8x128xf32>
    %c0_105 = arith.constant 0 : index
    %c0_106 = arith.constant 0 : index
    %211 = vector.load %arg9[%c0_105, %c0_106] : memref<8x128xf32, #tpu.memory_space<vmem>>, vector<8x128xf32>
    tpu.vector_store %arg9[%c0_105, %c0_106], %208 {strides = array<i32>} : memref<8x128xf32, #tpu.memory_space<vmem>>, vector<8x128xf32>,
    %c0_107 = arith.constant 0 : index
    %c0_108 = arith.constant 0 : index
    %212 = vector.load %arg8[%c0_107, %c0_108] : memref<8x128xf32, #tpu.memory_space<vmem>>, vector<8x128xf32>
    tpu.vector_store %arg8[%c0_107, %c0_108], %210 {strides = array<i32>} : memref<8x128xf32, #tpu.memory_space<vmem>>, vector<8x128xf32>,
    %c40_109 = arith.constant 40 : index
    %c0_110 = arith.constant 0 : index
    %213 = vector.load %arg5[%c40_109, %c0_110] : memref<64x128xf32, #tpu.memory_space<vmem>>, vector<8x128xf32>
    tpu.vector_store %arg5[%c40_109, %c0_110], %210 {strides = array<i32>} : memref<64x128xf32, #tpu.memory_space<vmem>>, vector<8x128xf32>,
    %c0_111 = arith.constant 0 : index
    %c0_112 = arith.constant 0 : index
    %214 = vector.load %arg8[%c0_111, %c0_112] : memref<8x128xf32, #tpu.memory_space<vmem>>, vector<8x128xf32>
    %c0_113 = arith.constant 0 : index
    %c0_114 = arith.constant 0 : index
    %215 = vector.load %arg9[%c0_113, %c0_114] : memref<8x128xf32, #tpu.memory_space<vmem>>, vector<8x128xf32>
    %c48 = arith.constant 48 : index
    %c0_115 = arith.constant 0 : index
    %216 = vector.load %arg10[%c48, %c0_115] : memref<64x512xf32, #tpu.memory_space<vmem>>, vector<8x512xf32>
    %c0_116 = arith.constant 0 : index
    %c0_117 = arith.constant 0 : index
    %217 = vector.load %arg3[%c0_116, %c0_117] : memref<128x512xf32, #tpu.memory_space<vmem>>, vector<128x512xf32>
    %cst_118 = arith.constant dense<0.000000e+00> : vector<8x512xf32>
    %218 = tpu.matmul %214, %217, %cst_118 {dimension_numbers = #tpu.dot_dimension_numbers<[1], [0], [0], [1], [0, 0, 1, 1], [], []>} : vector<8x128xf32>, vector<128x512xf32>, vector<8x512xf32> -> vector<8x512xf32>
    %219 = arith.addf %216, %218 : vector<8x512xf32>
    %220 = vector.extract_strided_slice %219 {offsets = [0, 0], sizes = [8, 128], strides = [1, 1]} : vector<8x512xf32> to vector<8x128xf32>
    %221 = arith.negf %220 : vector<8x128xf32>
    %222 = math.exp %221 : vector<8x128xf32>
    %cst_119 = arith.constant 1.000000e+00 : f32
    %223 = vector.broadcast %cst_119 : f32 to vector<8x128xf32>
    %224 = arith.addf %223, %222 : vector<8x128xf32>
    %225 = arith.divf %223, %224 : vector<8x128xf32>
    %226 = vector.extract_strided_slice %219 {offsets = [0, 128], sizes = [8, 128], strides = [1, 1]} : vector<8x512xf32> to vector<8x128xf32>
    %227 = arith.negf %226 : vector<8x128xf32>
    %228 = math.exp %227 : vector<8x128xf32>
    %cst_120 = arith.constant 1.000000e+00 : f32
    %229 = vector.broadcast %cst_120 : f32 to vector<8x128xf32>
    %230 = arith.addf %229, %228 : vector<8x128xf32>
    %231 = arith.divf %229, %230 : vector<8x128xf32>
    %232 = vector.extract_strided_slice %219 {offsets = [0, 256], sizes = [8, 128], strides = [1, 1]} : vector<8x512xf32> to vector<8x128xf32>
    %233 = math.tanh %232 : vector<8x128xf32>
    %234 = vector.extract_strided_slice %219 {offsets = [0, 384], sizes = [8, 128], strides = [1, 1]} : vector<8x512xf32> to vector<8x128xf32>
    %235 = arith.negf %234 : vector<8x128xf32>
    %236 = math.exp %235 : vector<8x128xf32>
    %cst_121 = arith.constant 1.000000e+00 : f32
    %237 = vector.broadcast %cst_121 : f32 to vector<8x128xf32>
    %238 = arith.addf %237, %236 : vector<8x128xf32>
    %239 = arith.divf %237, %238 : vector<8x128xf32>
    %240 = arith.mulf %231, %215 : vector<8x128xf32>
    %241 = arith.mulf %225, %233 : vector<8x128xf32>
    %242 = arith.addf %240, %241 : vector<8x128xf32>
    %243 = math.tanh %242 : vector<8x128xf32>
    %244 = arith.mulf %239, %243 : vector<8x128xf32>
    %c0_122 = arith.constant 0 : index
    %c0_123 = arith.constant 0 : index
    %245 = vector.load %arg9[%c0_122, %c0_123] : memref<8x128xf32, #tpu.memory_space<vmem>>, vector<8x128xf32>
    tpu.vector_store %arg9[%c0_122, %c0_123], %242 {strides = array<i32>} : memref<8x128xf32, #tpu.memory_space<vmem>>, vector<8x128xf32>,
    %c0_124 = arith.constant 0 : index
    %c0_125 = arith.constant 0 : index
    %246 = vector.load %arg8[%c0_124, %c0_125] : memref<8x128xf32, #tpu.memory_space<vmem>>, vector<8x128xf32>
    tpu.vector_store %arg8[%c0_124, %c0_125], %244 {strides = array<i32>} : memref<8x128xf32, #tpu.memory_space<vmem>>, vector<8x128xf32>,
    %c48_126 = arith.constant 48 : index
    %c0_127 = arith.constant 0 : index
    %247 = vector.load %arg5[%c48_126, %c0_127] : memref<64x128xf32, #tpu.memory_space<vmem>>, vector<8x128xf32>
    tpu.vector_store %arg5[%c48_126, %c0_127], %244 {strides = array<i32>} : memref<64x128xf32, #tpu.memory_space<vmem>>, vector<8x128xf32>,
    %c0_128 = arith.constant 0 : index
    %c0_129 = arith.constant 0 : index
    %248 = vector.load %arg8[%c0_128, %c0_129] : memref<8x128xf32, #tpu.memory_space<vmem>>, vector<8x128xf32>
    %c0_130 = arith.constant 0 : index
    %c0_131 = arith.constant 0 : index
    %249 = vector.load %arg9[%c0_130, %c0_131] : memref<8x128xf32, #tpu.memory_space<vmem>>, vector<8x128xf32>
    %c56 = arith.constant 56 : index
    %c0_132 = arith.constant 0 : index
    %250 = vector.load %arg10[%c56, %c0_132] : memref<64x512xf32, #tpu.memory_space<vmem>>, vector<8x512xf32>
    %c0_133 = arith.constant 0 : index
    %c0_134 = arith.constant 0 : index
    %251 = vector.load %arg3[%c0_133, %c0_134] : memref<128x512xf32, #tpu.memory_space<vmem>>, vector<128x512xf32>
    %cst_135 = arith.constant dense<0.000000e+00> : vector<8x512xf32>
    %252 = tpu.matmul %248, %251, %cst_135 {dimension_numbers = #tpu.dot_dimension_numbers<[1], [0], [0], [1], [0, 0, 1, 1], [], []>} : vector<8x128xf32>, vector<128x512xf32>, vector<8x512xf32> -> vector<8x512xf32>
    %253 = arith.addf %250, %252 : vector<8x512xf32>
    %254 = vector.extract_strided_slice %253 {offsets = [0, 0], sizes = [8, 128], strides = [1, 1]} : vector<8x512xf32> to vector<8x128xf32>
    %255 = arith.negf %254 : vector<8x128xf32>
    %256 = math.exp %255 : vector<8x128xf32>
    %cst_136 = arith.constant 1.000000e+00 : f32
    %257 = vector.broadcast %cst_136 : f32 to vector<8x128xf32>
    %258 = arith.addf %257, %256 : vector<8x128xf32>
    %259 = arith.divf %257, %258 : vector<8x128xf32>
    %260 = vector.extract_strided_slice %253 {offsets = [0, 128], sizes = [8, 128], strides = [1, 1]} : vector<8x512xf32> to vector<8x128xf32>
    %261 = arith.negf %260 : vector<8x128xf32>
    %262 = math.exp %261 : vector<8x128xf32>
    %cst_137 = arith.constant 1.000000e+00 : f32
    %263 = vector.broadcast %cst_137 : f32 to vector<8x128xf32>
    %264 = arith.addf %263, %262 : vector<8x128xf32>
    %265 = arith.divf %263, %264 : vector<8x128xf32>
    %266 = vector.extract_strided_slice %253 {offsets = [0, 256], sizes = [8, 128], strides = [1, 1]} : vector<8x512xf32> to vector<8x128xf32>
    %267 = math.tanh %266 : vector<8x128xf32>
    %268 = vector.extract_strided_slice %253 {offsets = [0, 384], sizes = [8, 128], strides = [1, 1]} : vector<8x512xf32> to vector<8x128xf32>
    %269 = arith.negf %268 : vector<8x128xf32>
    %270 = math.exp %269 : vector<8x128xf32>
    %cst_138 = arith.constant 1.000000e+00 : f32
    %271 = vector.broadcast %cst_138 : f32 to vector<8x128xf32>
    %272 = arith.addf %271, %270 : vector<8x128xf32>
    %273 = arith.divf %271, %272 : vector<8x128xf32>
    %274 = arith.mulf %265, %249 : vector<8x128xf32>
    %275 = arith.mulf %259, %267 : vector<8x128xf32>
    %276 = arith.addf %274, %275 : vector<8x128xf32>
    %277 = math.tanh %276 : vector<8x128xf32>
    %278 = arith.mulf %273, %277 : vector<8x128xf32>
    %c0_139 = arith.constant 0 : index
    %c0_140 = arith.constant 0 : index
    %279 = vector.load %arg9[%c0_139, %c0_140] : memref<8x128xf32, #tpu.memory_space<vmem>>, vector<8x128xf32>
    tpu.vector_store %arg9[%c0_139, %c0_140], %276 {strides = array<i32>} : memref<8x128xf32, #tpu.memory_space<vmem>>, vector<8x128xf32>,
    %c0_141 = arith.constant 0 : index
    %c0_142 = arith.constant 0 : index
    %280 = vector.load %arg8[%c0_141, %c0_142] : memref<8x128xf32, #tpu.memory_space<vmem>>, vector<8x128xf32>
    tpu.vector_store %arg8[%c0_141, %c0_142], %278 {strides = array<i32>} : memref<8x128xf32, #tpu.memory_space<vmem>>, vector<8x128xf32>,
    %c56_143 = arith.constant 56 : index
    %c0_144 = arith.constant 0 : index
    %281 = vector.load %arg5[%c56_143, %c0_144] : memref<64x128xf32, #tpu.memory_space<vmem>>, vector<8x128xf32>
    tpu.vector_store %arg5[%c56_143, %c0_144], %278 {strides = array<i32>} : memref<64x128xf32, #tpu.memory_space<vmem>>, vector<8x128xf32>,
    %c0_i32_145 = arith.constant 0 : i32
    %282 = arith.cmpi eq, %arg0, %c0_i32_145 : i32
    %283 = arith.extui %282 : i1 to i32
    %c0_i32_146 = arith.constant 0 : i32
    %284 = arith.cmpi ne, %283, %c0_i32_146 : i32
    scf.if %284 {
      %c0_147 = arith.constant 0 : index
      %c0_148 = arith.constant 0 : index
      %285 = vector.load %arg8[%c0_147, %c0_148] : memref<8x128xf32, #tpu.memory_space<vmem>>, vector<8x128xf32>
      %c0_149 = arith.constant 0 : index
      %c0_150 = arith.constant 0 : index
      %286 = vector.load %arg6[%c0_149, %c0_150] : memref<8x128xf32, #tpu.memory_space<vmem>>, vector<8x128xf32>
      tpu.vector_store %arg6[%c0_149, %c0_150], %285 {strides = array<i32>} : memref<8x128xf32, #tpu.memory_space<vmem>>, vector<8x128xf32>,
      %c0_151 = arith.constant 0 : index
      %c0_152 = arith.constant 0 : index
      %287 = vector.load %arg9[%c0_151, %c0_152] : memref<8x128xf32, #tpu.memory_space<vmem>>, vector<8x128xf32>
      %c0_153 = arith.constant 0 : index
      %c0_154 = arith.constant 0 : index
      %288 = vector.load %arg7[%c0_153, %c0_154] : memref<8x128xf32, #tpu.memory_space<vmem>>, vector<8x128xf32>
      tpu.vector_store %arg7[%c0_153, %c0_154], %287 {strides = array<i32>} : memref<8x128xf32, #tpu.memory_space<vmem>>, vector<8x128xf32>,
    } else {
    }
    return
  }
  func.func @transform_0(%arg0: i32) -> (i32, i32) {
    %c0_i32 = arith.constant 0 : i32
    %c0_i32_0 = arith.constant 0 : i32
    return %arg0, %c0_i32 : i32, i32
  }
  func.func @transform_1(%arg0: i32) -> (i32, i32) {
    %c0_i32 = arith.constant 0 : i32
    %c0_i32_0 = arith.constant 0 : i32
    %c0_i32_1 = arith.constant 0 : i32
    return %c0_i32, %c0_i32_0 : i32, i32
  }
  func.func @transform_2(%arg0: i32) -> (i32, i32) {
    %c0_i32 = arith.constant 0 : i32
    %c0_i32_0 = arith.constant 0 : i32
    %c0_i32_1 = arith.constant 0 : i32
    return %c0_i32, %c0_i32_0 : i32, i32
  }
  func.func @transform_3(%arg0: i32) -> (i32, i32) {
    %c0_i32 = arith.constant 0 : i32
    %c0_i32_0 = arith.constant 0 : i32
    %c0_i32_1 = arith.constant 0 : i32
    return %c0_i32, %c0_i32_0 : i32, i32
  }
  func.func @transform_4(%arg0: i32) -> (i32, i32) {
    %c0_i32 = arith.constant 0 : i32
    %c0_i32_0 = arith.constant 0 : i32
    return %arg0, %c0_i32 : i32, i32
  }
  func.func @transform_5(%arg0: i32) -> (i32, i32) {
    %c0_i32 = arith.constant 0 : i32
    %c0_i32_0 = arith.constant 0 : i32
    %c0_i32_1 = arith.constant 0 : i32
    return %c0_i32, %c0_i32_0 : i32, i32
  }
  func.func @transform_6(%arg0: i32) -> (i32, i32) {
    %c0_i32 = arith.constant 0 : i32
    %c0_i32_0 = arith.constant 0 : i32
    %c0_i32_1 = arith.constant 0 : i32
    return %c0_i32, %c0_i32_0 : i32, i32
  }
}

</mosaic_0001>

<bundles_post_ra>
// kernel: tpu_custom_call.1
= control target key start
LH: loop header
LB: loop body
LE: loop exit
PB: predicated region body
PF: predicated region fallthrough
CT: control target
= control target key end

     0   :  { %12 = vsyncpa [#allocation6], 0  ;;  %s3659_s0 = inlined_call_operand.hbm [shape: f32[64,128], index: 0, kind: input, shape index: {}]   ;;  %s3660_s1 = inlined_call_operand.hbm [shape: f32[128,512], index: 1, kind: input, shape index: {}]   ;;  %s3661_s2 = inlined_call_operand.hbm [shape: f32[128,512], index: 2, kind: input, shape index: {}]   ;;  %s3662_s3 = inlined_call_operand.vmem [shape: f32[1,512], index: 3, kind: input, shape index: {}]   ;;  %s3663_s4 = inlined_call_operand.hbm [shape: f32[64,128], index: 4, kind: output, shape index: {0}]   ;;  %s3664_s5 = inlined_call_operand.hbm [shape: f32[8,128], index: 5, kind: output, shape index: {1}]   ;;  %s3665_s6 = inlined_call_operand.hbm [shape: f32[8,128], index: 6, kind: output, shape index: {2}]  }
   0x1   :  { %13 = vsyncpa [#allocation9], 0 }
   0x2   :  { %14 = vsyncpa [#allocation7], 0 }
   0x3   :  { %15 = vsyncpa [#allocation13], 0  ;;  %s2708_s21 = smov [#allocation8]  }
   0x4   :  { %s33_s22 = sshll.u32 %s2708_s21, 4  ;;  %s34_s22 = int_to_ptr.vmem [resolvable:$true] %s33_s22 }
   0x5   :  { %s2588_s23 = scalar_lea.vmem %s34_s22, 8192  ;;  %p2593_p1 = scmp.lt.s32.totalorder %s34_s22, %s34_s22 }
   0x6   :  { %p2589_p0 = scmp.ne.s32.totalorder %s34_s22, %s2588_s23  ;;  %p2594_p2 = scmp.lt.s32.totalorder %s2588_s23, %s2588_s23 }
   0x8   :  { %p2595_p3 = por %p2594_p2, %p2593_p1 }
   0xa   :  { %p2596_p4 = pnand %p2595_p3, %p2589_p0 }
   0xc   :  { %2599 = shalt.err (!%p2596_p4)
}
   0xd   :  { %s2709_s24 = smov 512   ;;  %s2710_s25 = smov 32  }
   0xe   :  { %39 = dma.hbm_to_vmem [thread:$0]  %s3660_s1, 8192, %s34_s22, [#allocation9], %s2709_s24, %s2709_s24, %s2710_s25  }
   0xf   :  { %s2711_s28 = smov [#allocation5]  }
  0x10   :  { %s21_s29 = sshll.u32 %s2711_s28, 4  ;;  %s22_s29 = int_to_ptr.vmem [resolvable:$true] %s21_s29 }
  0x11   :  { %s2608_s30 = scalar_lea.vmem %s22_s29, 1024  ;;  %p2613_p6 = scmp.lt.s32.totalorder %s22_s29, %s22_s29 }
  0x12   :  { %p2609_p5 = scmp.ne.s32.totalorder %s22_s29, %s2608_s30  ;;  %p2614_p7 = scmp.lt.s32.totalorder %s2608_s30, %s2608_s30 }
  0x14   :  { %p2615_p8 = por %p2614_p7, %p2613_p6 }
  0x16   :  { %p2616_p9 = pnand %p2615_p8, %p2609_p5 }
  0x18   :  { %2619 = shalt.err (!%p2616_p9)
}
  0x19   :  { %s2712_s7 = smov 128   ;;  %s2713_s8 = smov 8  }
  0x1a   :  { %27 = dma.hbm_to_vmem [thread:$0]  %s3659_s0, 1024, %s22_s29, [#allocation6], %s2712_s7, %s2712_s7, %s2713_s8  }
  0x1b   :  { %s2714_s1 = smov [#allocation10]  }
  0x1c   :  { %s45_s11 = sshll.u32 %s2714_s1, 4  ;;  %s46_s11 = int_to_ptr.vmem [resolvable:$true] %s45_s11 }
  0x1d   :  { %s2628_s12 = scalar_lea.vmem %s46_s11, 8192  ;;  %p2633_p11 = scmp.lt.s32.totalorder %s46_s11, %s46_s11 }
  0x1e   :  { %p2629_p10 = scmp.ne.s32.totalorder %s46_s11, %s2628_s12  ;;  %p2634_p12 = scmp.lt.s32.totalorder %s2628_s12, %s2628_s12 }
  0x20   :  { %p2635_p13 = por %p2634_p12, %p2633_p11 }
  0x22   :  { %p2636_p0 = pnand %p2635_p13, %p2629_p10 }
  0x24   :  { %2639 = shalt.err (!%p2636_p0)
}
  0x25   :  { %51 = dma.hbm_to_vmem [thread:$0]  %s3661_s2, 8192, %s46_s11, [#allocation9], %s2709_s24, %s2709_s24, %s2710_s25  }
  0x26   :  { %2700 = dma.done.wait [#allocation6], 1024  }
  0x27   :  { %2701 = vsyncadd [#allocation6], 4294966272 }
  0x28   :  { %2702 = dma.done.wait [#allocation9], 16384  }
  0x29   :  { %2703 = vsyncadd [#allocation9], 4294950912  ;;  %v3666_v0 = vmov 0.0   ;;  %v138_v1 = vld [vmem:[#allocation8 + $0x1e8] sm:$0xff]  ;;  %v140_v2 = vld [vmem:[#allocation8 + $0x1f8] sm:$0xff]  ;;  %s2717_s16 = smov [#allocation11]  }
  0x2a   :  { %227 = vmatprep.mubr.f32.mxu0 %v3666_v0  ;;  %340 = vmatprep.mubr.f32.mxu1 %v3666_v0  ;;  %v137_v3 = vld [vmem:[#allocation8 + $0x1e0] sm:$0xff]  ;;  %v139_v4 = vld [vmem:[#allocation8 + $0x1f0] sm:$0xff]  ;;  %v134_v5 = vld [vmem:[#allocation8 + $0x1c8] sm:$0xff]  ;;  %s2377_s17 = sshll.u32 %s2717_s16, 4  ;;  %s2718_s18 = smov [#allocation14]   ;;  %s2378_s17 = int_to_ptr.vmem [resolvable:$true] %s2377_s17 }
  0x2b   :  { %163 = vmatprep.subr.mxu0 %v138_v1  ;;  %276 = vmatprep.subr.mxu1 %v140_v2  ;;  %v136_v6 = vld [vmem:[#allocation8 + $0x1d8] sm:$0xff]  ;;  %v133_v7 = vld [vmem:[#allocation8 + $0x1c0] sm:$0xff]  ;;  %v135_v8 = vld [vmem:[#allocation8 + $0x1d0] sm:$0xff]  ;;  %s2400_s19 = sshll.u32 %s2718_s18, 4  ;;  %s2401_s19 = int_to_ptr.vmem [resolvable:$true] %s2400_s19 }
  0x2c   :  { %164 = vmatpush1.msra.mxu0 %v137_v3  ;;  %277 = vmatpush1.msra.mxu1 %v139_v4  ;;  %v130_v9 = vld [vmem:[#allocation8 + $0x1a8] sm:$0xff]  ;;  %v132_v10 = vld [vmem:[#allocation8 + $0x1b8] sm:$0xff]  ;;  %v129_v11 = vld [vmem:[#allocation8 + $0x1a0] sm:$0xff] }
  0x2d   :  { %165 = vmatprep.subr.mxu0 %v134_v5  ;;  %278 = vmatprep.subr.mxu1 %v136_v6  ;;  %v131_v12 = vld [vmem:[#allocation8 + $0x1b0] sm:$0xff]  ;;  %v126_v13 = vld [vmem:[#allocation8 + $0x188] sm:$0xff]  ;;  %v128_v14 = vld [vmem:[#allocation8 + $0x198] sm:$0xff] }
  0x2e   :  { %166 = vmatpush1.msra.mxu0 %v133_v7  ;;  %279 = vmatpush1.msra.mxu1 %v135_v8  ;;  %v125_v15 = vld [vmem:[#allocation8 + $0x180] sm:$0xff]  ;;  %v127_v16 = vld [vmem:[#allocation8 + $0x190] sm:$0xff]  ;;  %v122_v17 = vld [vmem:[#allocation8 + $0x168] sm:$0xff] }
  0x2f   :  { %167 = vmatprep.subr.mxu0 %v130_v9  ;;  %280 = vmatprep.subr.mxu1 %v132_v10  ;;  %v124_v18 = vld [vmem:[#allocation8 + $0x178] sm:$0xff]  ;;  %v121_v19 = vld [vmem:[#allocation8 + $0x160] sm:$0xff]  ;;  %v123_v20 = vld [vmem:[#allocation8 + $0x170] sm:$0xff] }
  0x30   :  { %168 = vmatpush1.msra.mxu0 %v129_v11  ;;  %281 = vmatpush1.msra.mxu1 %v131_v12  ;;  %v118_v21 = vld [vmem:[#allocation8 + $0x148] sm:$0xff]  ;;  %v120_v22 = vld [vmem:[#allocation8 + $0x158] sm:$0xff]  ;;  %v117_v23 = vld [vmem:[#allocation8 + $0x140] sm:$0xff] }
  0x31   :  { %169 = vmatprep.subr.mxu0 %v126_v13  ;;  %282 = vmatprep.subr.mxu1 %v128_v14  ;;  %v119_v24 = vld [vmem:[#allocation8 + $0x150] sm:$0xff]  ;;  %v114_v25 = vld [vmem:[#allocation8 + $0x128] sm:$0xff]  ;;  %v116_v26 = vld [vmem:[#allocation8 + $0x138] sm:$0xff] }
  0x32   :  { %170 = vmatpush1.msra.mxu0 %v125_v15  ;;  %283 = vmatpush1.msra.mxu1 %v127_v16  ;;  %v113_v27 = vld [vmem:[#allocation8 + $0x120] sm:$0xff]  ;;  %v115_v28 = vld [vmem:[#allocation8 + $0x130] sm:$0xff]  ;;  %v110_v29 = vld [vmem:[#allocation8 + $0x108] sm:$0xff] }
  0x33   :  { %171 = vmatprep.subr.mxu0 %v122_v17  ;;  %284 = vmatprep.subr.mxu1 %v124_v18  ;;  %v112_v30 = vld [vmem:[#allocation8 + $0x118] sm:$0xff]  ;;  %v109_v31 = vld [vmem:[#allocation8 + $0x100] sm:$0xff]  ;;  %v111_v32 = vld [vmem:[#allocation8 + $0x110] sm:$0xff] }
  0x34   :  { %172 = vmatpush1.msra.mxu0 %v121_v19  ;;  %285 = vmatpush1.msra.mxu1 %v123_v20  ;;  %v106_v33 = vld [vmem:[#allocation8 + $0xe8] sm:$0xff]  ;;  %v108_v34 = vld [vmem:[#allocation8 + $0xf8] sm:$0xff]  ;;  %v105_v35 = vld [vmem:[#allocation8 + $0xe0] sm:$0xff] }
  0x35   :  { %173 = vmatprep.subr.mxu0 %v118_v21  ;;  %286 = vmatprep.subr.mxu1 %v120_v22  ;;  %v107_v36 = vld [vmem:[#allocation8 + $0xf0] sm:$0xff]  ;;  %v102_v37 = vld [vmem:[#allocation8 + $0xc8] sm:$0xff]  ;;  %v104_v38 = vld [vmem:[#allocation8 + $0xd8] sm:$0xff] }
  0x36   :  { %174 = vmatpush1.msra.mxu0 %v117_v23  ;;  %287 = vmatpush1.msra.mxu1 %v119_v24  ;;  %v101_v39 = vld [vmem:[#allocation8 + $0xc0] sm:$0xff]  ;;  %v103_v40 = vld [vmem:[#allocation8 + $0xd0] sm:$0xff]  ;;  %v98_v41 = vld [vmem:[#allocation8 + $0xa8] sm:$0xff] }
  0x37   :  { %175 = vmatprep.subr.mxu0 %v114_v25  ;;  %288 = vmatprep.subr.mxu1 %v116_v26  ;;  %v100_v42 = vld [vmem:[#allocation8 + $0xb8] sm:$0xff]  ;;  %v97_v43 = vld [vmem:[#allocation8 + $0xa0] sm:$0xff]  ;;  %v99_v44 = vld [vmem:[#allocation8 + $0xb0] sm:$0xff] }
  0x38   :  { %176 = vmatpush1.msra.mxu0 %v113_v27  ;;  %289 = vmatpush1.msra.mxu1 %v115_v28  ;;  %v94_v45 = vld [vmem:[#allocation8 + $0x88] sm:$0xff]  ;;  %v96_v46 = vld [vmem:[#allocation8 + $0x98] sm:$0xff]  ;;  %v93_v47 = vld [vmem:[#allocation8 + $0x80] sm:$0xff] }
  0x39   :  { %177 = vmatprep.subr.mxu0 %v110_v29  ;;  %290 = vmatprep.subr.mxu1 %v112_v30  ;;  %v95_v48 = vld [vmem:[#allocation8 + $0x90] sm:$0xff]  ;;  %v90_v49 = vld [vmem:[#allocation8 + $0x68] sm:$0xff]  ;;  %v92_v50 = vld [vmem:[#allocation8 + $0x78] sm:$0xff] }
  0x3a   :  { %178 = vmatpush1.msra.mxu0 %v109_v31  ;;  %291 = vmatpush1.msra.mxu1 %v111_v32  ;;  %v89_v51 = vld [vmem:[#allocation8 + $0x60] sm:$0xff]  ;;  %v91_v52 = vld [vmem:[#allocation8 + $0x70] sm:$0xff]  ;;  %v86_v53 = vld [vmem:[#allocation8 + $0x48] sm:$0xff] }
  0x3b   :  { %179 = vmatprep.subr.mxu0 %v106_v33  ;;  %292 = vmatprep.subr.mxu1 %v108_v34  ;;  %v88_v54 = vld [vmem:[#allocation8 + $0x58] sm:$0xff]  ;;  %v85_v55 = vld [vmem:[#allocation8 + $0x40] sm:$0xff]  ;;  %v87_v56 = vld [vmem:[#allocation8 + $0x50] sm:$0xff] }
  0x3c   :  { %180 = vmatpush1.msra.mxu0 %v105_v35  ;;  %293 = vmatpush1.msra.mxu1 %v107_v36  ;;  %v82_v57 = vld [vmem:[#allocation8 + $0x28] sm:$0xff]  ;;  %v84_v58 = vld [vmem:[#allocation8 + $0x38] sm:$0xff]  ;;  %v81_v59 = vld [vmem:[#allocation8 + $0x20] sm:$0xff] }
  0x3d   :  { %181 = vmatprep.subr.mxu0 %v102_v37  ;;  %294 = vmatprep.subr.mxu1 %v104_v38  ;;  %v83_v60 = vld [vmem:[#allocation8 + $0x30] sm:$0xff]  ;;  %v78_v61 = vld [vmem:[#allocation8 + $0x8] sm:$0xff]  ;;  %v80_v62 = vld [vmem:[#allocation8 + $0x18] sm:$0xff] }
  0x3e   :  { %182 = vmatpush1.msra.mxu0 %v101_v39  ;;  %295 = vmatpush1.msra.mxu1 %v103_v40  ;;  %v77_v63 = vld [vmem:[#allocation8] sm:$0xff]  ;;  %v79_v1 = vld [vmem:[#allocation8 + $0x10] sm:$0xff]  ;;  %v2768_v3 = vld [vmem:[#allocation10 + $0x1e8] sm:$0xff] }
  0x3f   :  { %183 = vmatprep.subr.mxu0 %v98_v41  ;;  %296 = vmatprep.subr.mxu1 %v100_v42  ;;  %v69_v2 = vld [vmem:[#allocation5] sm:$0xff]  ;;  %v2770_v4 = vld [vmem:[#allocation10 + $0x1f8] sm:$0xff]  ;;  %v2774_v6 = vld [vmem:[#allocation10 + $0x1f0] sm:$0xff] }
  0x40   :  { %184 = vmatpush1.msra.mxu0 %v97_v43  ;;  %297 = vmatpush1.msra.mxu1 %v99_v44  ;;  %v2772_v5 = vld [vmem:[#allocation10 + $0x1e0] sm:$0xff]  ;;  %v2776_v7 = vld [vmem:[#allocation10 + $0x1c8] sm:$0xff]  ;;  %v2778_v8 = vld [vmem:[#allocation10 + $0x1d8] sm:$0xff] }
  0x41   :  { %185 = vmatprep.subr.mxu0 %v94_v45  ;;  %298 = vmatprep.subr.mxu1 %v96_v46  ;;  %v2784_v9 = vld [vmem:[#allocation10 + $0x1c0] sm:$0xff]  ;;  %v2786_v10 = vld [vmem:[#allocation10 + $0x1d0] sm:$0xff]  ;;  %v70_v11 = vld [vmem:[#allocation5 + $0x8] sm:$0xff] }
  0x42   :  { %186 = vmatpush1.msra.mxu0 %v93_v47  ;;  %299 = vmatpush1.msra.mxu1 %v95_v48  ;;  %v2792_v12 = vld [vmem:[#allocation10 + $0x1a8] sm:$0xff]  ;;  %v2794_v13 = vld [vmem:[#allocation10 + $0x1b8] sm:$0xff]  ;;  %v2798_v14 = vld [vmem:[#allocation10 + $0x1a0] sm:$0xff] }
  0x43   :  { %187 = vmatprep.subr.mxu0 %v90_v49  ;;  %300 = vmatprep.subr.mxu1 %v92_v50  ;;  %v2800_v15 = vld [vmem:[#allocation10 + $0x1b0] sm:$0xff]  ;;  %v2802_v16 = vld [vmem:[#allocation10 + $0x188] sm:$0xff]  ;;  %v2804_v17 = vld [vmem:[#allocation10 + $0x198] sm:$0xff] }
  0x44   :  { %188 = vmatpush1.msra.mxu0 %v89_v51  ;;  %301 = vmatpush1.msra.mxu1 %v91_v52  ;;  %v2810_v18 = vld [vmem:[#allocation10 + $0x180] sm:$0xff]  ;;  %v2812_v19 = vld [vmem:[#allocation10 + $0x190] sm:$0xff]  ;;  %v2818_v21 = vld [vmem:[#allocation10 + $0x168] sm:$0xff] }
  0x45   :  { %189 = vmatprep.subr.mxu0 %v86_v53  ;;  %302 = vmatprep.subr.mxu1 %v88_v54  ;;  %v71_v20 = vld [vmem:[#allocation5 + $0x10] sm:$0xff]  ;;  %v2820_v22 = vld [vmem:[#allocation10 + $0x178] sm:$0xff]  ;;  %v2824_v23 = vld [vmem:[#allocation10 + $0x160] sm:$0xff] }
  0x46   :  { %190 = vmatpush1.msra.mxu0 %v85_v55  ;;  %303 = vmatpush1.msra.mxu1 %v87_v56  ;;  %v2826_v24 = vld [vmem:[#allocation10 + $0x170] sm:$0xff]  ;;  %v2828_v25 = vld [vmem:[#allocation10 + $0x148] sm:$0xff]  ;;  %v2830_v26 = vld [vmem:[#allocation10 + $0x158] sm:$0xff] }
  0x47   :  { %191 = vmatprep.subr.mxu0 %v82_v57  ;;  %304 = vmatprep.subr.mxu1 %v84_v58  ;;  %v2836_v27 = vld [vmem:[#allocation10 + $0x140] sm:$0xff]  ;;  %v2838_v28 = vld [vmem:[#allocation10 + $0x150] sm:$0xff]  ;;  %v72_v29 = vld [vmem:[#allocation5 + $0x18] sm:$0xff] }
  0x48   :  { %192 = vmatpush1.msra.mxu0 %v81_v59  ;;  %305 = vmatpush1.msra.mxu1 %v83_v60  ;;  %v2844_v30 = vld [vmem:[#allocation10 + $0x128] sm:$0xff]  ;;  %v2846_v31 = vld [vmem:[#allocation10 + $0x138] sm:$0xff]  ;;  %v2850_v32 = vld [vmem:[#allocation10 + $0x120] sm:$0xff] }
  0x49   :  { %193 = vmatprep.subr.mxu0 %v78_v61  ;;  %306 = vmatprep.subr.mxu1 %v80_v62  ;;  %v2852_v33 = vld [vmem:[#allocation10 + $0x130] sm:$0xff]  ;;  %v2854_v34 = vld [vmem:[#allocation10 + $0x108] sm:$0xff]  ;;  %v2856_v35 = vld [vmem:[#allocation10 + $0x118] sm:$0xff] }
  0x4a   :  { %194 = vmatpush1.msra.mxu0 %v77_v63  ;;  %307 = vmatpush1.msra.mxu1 %v79_v1  ;;  %v2862_v36 = vld [vmem:[#allocation10 + $0x100] sm:$0xff]  ;;  %v2864_v37 = vld [vmem:[#allocation10 + $0x110] sm:$0xff]  ;;  %v2870_v39 = vld [vmem:[#allocation10 + $0xe8] sm:$0xff] }
  0x4b   :  { %228 = vmatmul.mubr.f32.vlgmr.msra.gmra.mxu0 %v69_v2  ;;  %341 = vmatmul.mubr.f32.vlgmr.msra.gmra.mxu1 %v69_v2  ;;  %v73_v38 = vld [vmem:[#allocation5 + $0x20] sm:$0xff]  ;;  %v2872_v40 = vld [vmem:[#allocation10 + $0xf8] sm:$0xff]  ;;  %v2878_v42 = vld [vmem:[#allocation10 + $0xf0] sm:$0xff] }
  0x4c   :  { %491 = vmatprep.subr.mxu0 %v2768_v3  ;;  %562 = vmatprep.subr.mxu1 %v2770_v4  ;;  %v2876_v41 = vld [vmem:[#allocation10 + $0xe0] sm:$0xff]  ;;  %v2880_v43 = vld [vmem:[#allocation10 + $0xc8] sm:$0xff]  ;;  %v2882_v44 = vld [vmem:[#allocation10 + $0xd8] sm:$0xff] }
  0x4d   :  { %492 = vmatpush1.msra.mxu0 %v2772_v5  ;;  %563 = vmatpush1.msra.mxu1 %v2774_v6  ;;  %v2888_v45 = vld [vmem:[#allocation10 + $0xc0] sm:$0xff]  ;;  %v2890_v46 = vld [vmem:[#allocation10 + $0xd0] sm:$0xff]  ;;  %v74_v47 = vld [vmem:[#allocation5 + $0x28] sm:$0xff] }
  0x4e   :  { %493 = vmatprep.subr.mxu0 %v2776_v7  ;;  %564 = vmatprep.subr.mxu1 %v2778_v8  ;;  %v2896_v48 = vld [vmem:[#allocation10 + $0xa8] sm:$0xff]  ;;  %v2898_v49 = vld [vmem:[#allocation10 + $0xb8] sm:$0xff]  ;;  %v2902_v50 = vld [vmem:[#allocation10 + $0xa0] sm:$0xff] }
  0x4f   :  { %233 = vmatprep.mubr.f32.mxu0 %v3666_v0  ;;  %346 = vmatprep.mubr.f32.mxu1 %v3666_v0  ;;  %v2904_v51 = vld [vmem:[#allocation10 + $0xb0] sm:$0xff]  ;;  %v2906_v52 = vld [vmem:[#allocation10 + $0x88] sm:$0xff]  ;;  %v2908_v53 = vld [vmem:[#allocation10 + $0x98] sm:$0xff] }
  0x50   :  { %494 = vmatpush1.msra.mxu0 %v2784_v9  ;;  %565 = vmatpush1.msra.mxu1 %v2786_v10  ;;  %3731 = vst [vmem:[#allocation19_spill] sm:$0xff] %v2906_v52  ;;  %3732 = vst [vmem:[#allocation20_spill] sm:$0xff] %v2908_v53  ;;  %v2914_v54 = vld [vmem:[#allocation10 + $0x80] sm:$0xff]  ;;  %v2916_v55 = vld [vmem:[#allocation10 + $0x90] sm:$0xff] }
  0x51   :  { %234 = vmatmul.mubr.f32.gmra.mxu0 %v70_v11  ;;  %347 = vmatmul.mubr.f32.gmra.mxu1 %v70_v11  ;;  %3733 = vst [vmem:[#allocation21_spill] sm:$0xff] %v2914_v54  ;;  %3734 = vst [vmem:[#allocation22_spill] sm:$0xff] %v2916_v55  ;;  %v75_v56 = vld [vmem:[#allocation5 + $0x30] sm:$0xff]  ;;  %v2922_v57 = vld [vmem:[#allocation10 + $0x68] sm:$0xff] }
  0x52   :  { %495 = vmatprep.subr.mxu0 %v2792_v12  ;;  %566 = vmatprep.subr.mxu1 %v2794_v13  ;;  %3735 = vst [vmem:[#allocation23_spill] sm:$0xff] %v2922_v57  ;;  %v2924_v58 = vld [vmem:[#allocation10 + $0x78] sm:$0xff]  ;;  %v2928_v59 = vld [vmem:[#allocation10 + $0x60] sm:$0xff]  ;;  %v2930_v60 = vld [vmem:[#allocation10 + $0x70] sm:$0xff] }
  0x53   :  { %496 = vmatpush1.msra.mxu0 %v2798_v14  ;;  %567 = vmatpush1.msra.mxu1 %v2800_v15  ;;  %3736 = vst [vmem:[#allocation24_spill] sm:$0xff] %v2924_v58  ;;  %3737 = vst [vmem:[#allocation25_spill] sm:$0xff] %v2928_v59  ;;  %v2932_v61 = vld [vmem:[#allocation10 + $0x48] sm:$0xff]  ;;  %v2934_v62 = vld [vmem:[#allocation10 + $0x58] sm:$0xff] }
  0x54   :  { %497 = vmatprep.subr.mxu0 %v2802_v16  ;;  %568 = vmatprep.subr.mxu1 %v2804_v17  ;;  %3738 = vst [vmem:[#allocation26_spill] sm:$0xff] %v2930_v60  ;;  %3739 = vst [vmem:[#allocation27_spill] sm:$0xff] %v2932_v61  ;;  %v2940_v63 = vld [vmem:[#allocation10 + $0x40] sm:$0xff]  ;;  %v2942_v1 = vld [vmem:[#allocation10 + $0x50] sm:$0xff] }
  0x55   :  { %239 = vmatprep.mubr.f32.mxu0 %v3666_v0  ;;  %352 = vmatprep.mubr.f32.mxu1 %v3666_v0  ;;  %3740 = vst [vmem:[#allocation28_spill] sm:$0xff] %v2934_v62  ;;  %3741 = vst [vmem:[#allocation29_spill] sm:$0xff] %v2940_v63  ;;  %v76_v2 = vld [vmem:[#allocation5 + $0x38] sm:$0xff]  ;;  %v2948_v11 = vld [vmem:[#allocation10 + $0x28] sm:$0xff] }
  0x56   :  { %498 = vmatpush1.msra.mxu0 %v2810_v18  ;;  %569 = vmatpush1.msra.mxu1 %v2812_v19  ;;  %3742 = vst [vmem:[#allocation30_spill] sm:$0xff] %v2942_v1  ;;  %3743 = vst [vmem:[#allocation31_spill] sm:$0xff] %v2948_v11 }
  0x57   :  { %240 = vmatmul.mubr.f32.gmra.mxu0 %v71_v20  ;;  %353 = vmatmul.mubr.f32.gmra.mxu1 %v71_v20  ;;  %v2950_v20 = vld [vmem:[#allocation10 + $0x38] sm:$0xff] }
  0x58   :  { %499 = vmatprep.subr.mxu0 %v2818_v21  ;;  %570 = vmatprep.subr.mxu1 %v2820_v22  ;;  %3744 = vst [vmem:[#allocation32_spill] sm:$0xff] %v2950_v20 }
  0x59   :  { %500 = vmatpush1.msra.mxu0 %v2824_v23  ;;  %571 = vmatpush1.msra.mxu1 %v2826_v24 }
  0x5a   :  { %501 = vmatprep.subr.mxu0 %v2828_v25  ;;  %572 = vmatprep.subr.mxu1 %v2830_v26 }
  0x5b   :  { %245 = vmatprep.mubr.f32.mxu0 %v3666_v0  ;;  %358 = vmatprep.mubr.f32.mxu1 %v3666_v0 }
  0x5c   :  { %502 = vmatpush1.msra.mxu0 %v2836_v27  ;;  %573 = vmatpush1.msra.mxu1 %v2838_v28 }
  0x5d   :  { %246 = vmatmul.mubr.f32.gmra.mxu0 %v72_v29  ;;  %359 = vmatmul.mubr.f32.gmra.mxu1 %v72_v29  ;;  %v2954_v29 = vld [vmem:[#allocation10 + $0x20] sm:$0xff] }
  0x5e   :  { %503 = vmatprep.subr.mxu0 %v2844_v30  ;;  %574 = vmatprep.subr.mxu1 %v2846_v31  ;;  %3745 = vst [vmem:[#allocation33_spill] sm:$0xff] %v2954_v29 }
  0x5f   :  { %504 = vmatpush1.msra.mxu0 %v2850_v32  ;;  %575 = vmatpush1.msra.mxu1 %v2852_v33 }
  0x60   :  { %505 = vmatprep.subr.mxu0 %v2854_v34  ;;  %576 = vmatprep.subr.mxu1 %v2856_v35 }
  0x61   :  { %251 = vmatprep.mubr.f32.mxu0 %v3666_v0  ;;  %364 = vmatprep.mubr.f32.mxu1 %v3666_v0 }
  0x62   :  { %506 = vmatpush1.msra.mxu0 %v2862_v36  ;;  %577 = vmatpush1.msra.mxu1 %v2864_v37 }
  0x63   :  { %252 = vmatmul.mubr.f32.gmra.mxu0 %v73_v38  ;;  %365 = vmatmul.mubr.f32.gmra.mxu1 %v73_v38  ;;  %v2956_v38 = vld [vmem:[#allocation10 + $0x30] sm:$0xff] }
  0x64   :  { %507 = vmatprep.subr.mxu0 %v2870_v39  ;;  %578 = vmatprep.subr.mxu1 %v2872_v40  ;;  %3746 = vst [vmem:[#allocation34_spill] sm:$0xff] %v2956_v38 }
  0x65   :  { %508 = vmatpush1.msra.mxu0 %v2876_v41  ;;  %579 = vmatpush1.msra.mxu1 %v2878_v42 }
  0x66   :  { %509 = vmatprep.subr.mxu0 %v2880_v43  ;;  %580 = vmatprep.subr.mxu1 %v2882_v44 }
  0x67   :  { %257 = vmatprep.mubr.f32.mxu0 %v3666_v0  ;;  %370 = vmatprep.mubr.f32.mxu1 %v3666_v0 }
  0x68   :  { %510 = vmatpush1.msra.mxu0 %v2888_v45  ;;  %581 = vmatpush1.msra.mxu1 %v2890_v46 }
  0x69   :  { %258 = vmatmul.mubr.f32.gmra.mxu0 %v74_v47  ;;  %371 = vmatmul.mubr.f32.gmra.mxu1 %v74_v47  ;;  %v2958_v47 = vld [vmem:[#allocation10 + $0x8] sm:$0xff] }
  0x6a   :  { %511 = vmatprep.subr.mxu0 %v2896_v48  ;;  %582 = vmatprep.subr.mxu1 %v2898_v49  ;;  %3747 = vst [vmem:[#allocation35_spill] sm:$0xff] %v2958_v47 }
  0x6b   :  { %512 = vmatpush1.msra.mxu0 %v2902_v50  ;;  %583 = vmatpush1.msra.mxu1 %v2904_v51 }
  0x6c   :  { %513 = vmatprep.subr.mxu0 %v2906_v52  ;;  %584 = vmatprep.subr.mxu1 %v2908_v53 }
  0x6d   :  { %263 = vmatprep.mubr.f32.mxu0 %v3666_v0  ;;  %376 = vmatprep.mubr.f32.mxu1 %v3666_v0 }
  0x6e   :  { %514 = vmatpush1.msra.mxu0 %v2914_v54  ;;  %585 = vmatpush1.msra.mxu1 %v2916_v55 }
  0x6f   :  { %264 = vmatmul.mubr.f32.gmra.mxu0 %v75_v56  ;;  %377 = vmatmul.mubr.f32.gmra.mxu1 %v75_v56  ;;  %v2960_v56 = vld [vmem:[#allocation10 + $0x18] sm:$0xff] }
  0x70   :  { %515 = vmatprep.subr.mxu0 %v2922_v57  ;;  %586 = vmatprep.subr.mxu1 %v2924_v58  ;;  %3748 = vst [vmem:[#allocation36_spill] sm:$0xff] %v2960_v56 }
  0x71   :  { %516 = vmatpush1.msra.mxu0 %v2928_v59  ;;  %587 = vmatpush1.msra.mxu1 %v2930_v60 }
  0x72   :  { %517 = vmatprep.subr.mxu0 %v2932_v61  ;;  %588 = vmatprep.subr.mxu1 %v2934_v62 }
  0x73   :  { %269 = vmatprep.mubr.f32.mxu0 %v3666_v0  ;;  %382 = vmatprep.mubr.f32.mxu1 %v3666_v0  ;;  %v2964_v0 = vld [vmem:[#allocation10] sm:$0xff] }
  0x74   :  { %518 = vmatpush1.msra.mxu0 %v2940_v63  ;;  %589 = vmatpush1.msra.mxu1 %v2942_v1  ;;  %3749 = vst [vmem:[#allocation37_spill] sm:$0xff] %v2964_v0  ;;  %v2968_v1 = vld [vmem:[#allocation10 + $0x10] sm:$0xff] }
  0x75   :  { %270 = vmatmul.mubr.f32.gmra.mxu0 %v76_v2  ;;  %383 = vmatmul.mubr.f32.gmra.mxu1 %v76_v2  ;;  %3750 = vst [vmem:[#allocation38_spill] sm:$0xff] %v2968_v1  ;;  %v3751_v2 = vmov 0.0  }
  0x76   :  { %519 = vmatprep.subr.mxu0 %v2948_v11  ;;  %590 = vmatprep.subr.mxu1 %v2950_v20 }
  0x77   :  { %520 = vmatpush1.msra.mxu0 %v2954_v29  ;;  %591 = vmatpush1.msra.mxu1 %v2956_v38 }
  0x78   :  { %521 = vmatprep.subr.mxu0 %v2958_v47  ;;  %592 = vmatprep.subr.mxu1 %v2960_v56 }
  0x79   :  { %522 = vmatpush1.msra.mxu0 %v2964_v0  ;;  %555 = vmatprep.mubr.f32.mxu0 %v3751_v2 }
  0x7a   :  { %593 = vmatpush1.msra.mxu1 %v2968_v1  ;;  %626 = vmatprep.mubr.f32.mxu1 %v3751_v2 }
  0x7b   :  { %556 = vmatmul.mubr.f32.vlgmr.msra.gmra.mxu0 %v3751_v2  ;;  %627 = vmatmul.mubr.f32.vlgmr.msra.gmra.mxu1 %v3751_v2 }
  0x7c   :  { %734 = vmatprep.subr.mxu0 %v2768_v3  ;;  %805 = vmatprep.subr.mxu1 %v2770_v4 }
  0x7d   :  { %735 = vmatpush1.msra.mxu0 %v2772_v5  ;;  %806 = vmatpush1.msra.mxu1 %v2774_v6 }
  0x7e   :  { %736 = vmatprep.subr.mxu0 %v2776_v7  ;;  %807 = vmatprep.subr.mxu1 %v2778_v8 }
  0x7f   :  { %737 = vmatpush1.msra.mxu0 %v2784_v9  ;;  %808 = vmatpush1.msra.mxu1 %v2786_v10 }
  0x80   :  { %738 = vmatprep.subr.mxu0 %v2792_v12  ;;  %809 = vmatprep.subr.mxu1 %v2794_v13 }
  0x81   :  { %739 = vmatpush1.msra.mxu0 %v2798_v14  ;;  %810 = vmatpush1.msra.mxu1 %v2800_v15 }
  0x82   :  { %740 = vmatprep.subr.mxu0 %v2802_v16  ;;  %811 = vmatprep.subr.mxu1 %v2804_v17 }
  0x83   :  { %741 = vmatpush1.msra.mxu0 %v2810_v18  ;;  %812 = vmatpush1.msra.mxu1 %v2812_v19 }
  0x84   :  { %742 = vmatprep.subr.mxu0 %v2818_v21  ;;  %813 = vmatprep.subr.mxu1 %v2820_v22 }
  0x85   :  { %743 = vmatpush1.msra.mxu0 %v2824_v23  ;;  %814 = vmatpush1.msra.mxu1 %v2826_v24 }
  0x86   :  { %744 = vmatprep.subr.mxu0 %v2828_v25  ;;  %815 = vmatprep.subr.mxu1 %v2830_v26 }
  0x87   :  { %745 = vmatpush1.msra.mxu0 %v2836_v27  ;;  %816 = vmatpush1.msra.mxu1 %v2838_v28 }
  0x88   :  { %746 = vmatprep.subr.mxu0 %v2844_v30  ;;  %817 = vmatprep.subr.mxu1 %v2846_v31 }
  0x89   :  { %747 = vmatpush1.msra.mxu0 %v2850_v32  ;;  %818 = vmatpush1.msra.mxu1 %v2852_v33 }
  0x8a   :  { %748 = vmatprep.subr.mxu0 %v2854_v34  ;;  %819 = vmatprep.subr.mxu1 %v2856_v35 }
  0x8b   :  { %749 = vmatpush1.msra.mxu0 %v2862_v36  ;;  %820 = vmatpush1.msra.mxu1 %v2864_v37 }
  0x8c   :  { %750 = vmatprep.subr.mxu0 %v2870_v39  ;;  %821 = vmatprep.subr.mxu1 %v2872_v40 }
  0x8d   :  { %751 = vmatpush1.msra.mxu0 %v2876_v41  ;;  %822 = vmatpush1.msra.mxu1 %v2878_v42 }
  0x8e   :  { %752 = vmatprep.subr.mxu0 %v2880_v43  ;;  %823 = vmatprep.subr.mxu1 %v2882_v44 }
  0x8f   :  { %753 = vmatpush1.msra.mxu0 %v2888_v45  ;;  %824 = vmatpush1.msra.mxu1 %v2890_v46 }
  0x90   :  { %754 = vmatprep.subr.mxu0 %v2896_v48  ;;  %825 = vmatprep.subr.mxu1 %v2898_v49 }
  0x91   :  { %755 = vmatpush1.msra.mxu0 %v2902_v50  ;;  %826 = vmatpush1.msra.mxu1 %v2904_v51 }
  0x92   :  { %756 = vmatprep.subr.mxu0 %v2906_v52  ;;  %827 = vmatprep.subr.mxu1 %v2908_v53  ;;  %v3752_v52 = vld [vmem:[#allocation30_spill] sm:$0xff] }
  0x93   :  { %757 = vmatpush1.msra.mxu0 %v2914_v54  ;;  %828 = vmatpush1.msra.mxu1 %v2916_v55 }
  0x94   :  { %758 = vmatprep.subr.mxu0 %v2922_v57  ;;  %829 = vmatprep.subr.mxu1 %v2924_v58 }
  0x95   :  { %759 = vmatpush1.msra.mxu0 %v2928_v59  ;;  %830 = vmatpush1.msra.mxu1 %v2930_v60 }
  0x96   :  { %760 = vmatprep.subr.mxu0 %v2932_v61  ;;  %831 = vmatprep.subr.mxu1 %v2934_v62 }
  0x97   :  { %761 = vmatpush1.msra.mxu0 %v2940_v63  ;;  %832 = vmatpush1.msra.mxu1 %v3752_v52 }
  0x98   :  { %762 = vmatprep.subr.mxu0 %v2948_v11  ;;  %833 = vmatprep.subr.mxu1 %v2950_v20  ;;  %v143_v20 = vlaneseq }
  0x99   :  { %763 = vmatpush1.msra.mxu0 %v2954_v29  ;;  %834 = vmatpush1.msra.mxu1 %v2956_v38 }
  0x9a   :  { %764 = vmatprep.subr.mxu0 %v2958_v47  ;;  %835 = vmatprep.subr.mxu1 %v2960_v56  ;;  %v144_v29 = vshrl.u32 %v143_v20, 7 }
  0x9b   :  { %765 = vmatpush1.msra.mxu0 %v2964_v0  ;;  %798 = vmatprep.mubr.f32.mxu0 %v3751_v2  ;;  %v141_v0 = vld [vmem:[%s3662_s3] sm:$0xf]  ;;  %s2716_s3 = smov [#allocation12]  }
  0x9c   :  { %836 = vmatpush1.msra.mxu1 %v2968_v1  ;;  %869 = vmatprep.mubr.f32.mxu1 %v3751_v2  ;;  %v145_v47 = vsub.s32 0, %v144_v29  ;;  %v153_v56 = vsub.s32 2, %v144_v29  ;;  %v149_v2 = vsub.s32 1, %v144_v29  ;;  %s2390_s15 = sshll.u32 %s2716_s3, 4  ;;  %s2391_s15 = int_to_ptr.vmem [resolvable:$true] %s2390_s15 }
  0x9d   :  { %977 = vmatprep.subr.mxu0 %v2768_v3  ;;  %1048 = vmatprep.subr.mxu1 %v2770_v4  ;;  %v157_v3 = vsub.s32 3, %v144_v29  ;;  %s2640_s20 = scalar_lea.vmem %s2391_s15, 128  ;;  %p2645_p2 = scmp.lt.s32.totalorder %s2391_s15, %s2391_s15 }
  0x9e   :  { %v146_v63 = vrot.slane %v141_v0, %v145_v47  ;;  %v3057_v4 = vrot.slane %v141_v0, %v153_v56  ;;  %v150_v61 = vrot.slane %v141_v0, %v149_v2  ;;  %p2641_p1 = scmp.ne.s32.totalorder %s2391_s15, %s2640_s20  ;;  %p2646_p3 = scmp.lt.s32.totalorder %s2640_s20, %s2640_s20 }
  0x9f   :  { %v3059_v60 = vrot.slane %v141_v0, %v157_v3 }
  0xa0   :  { %p2647_p4 = por %p2646_p3, %p2645_p2 }
  0xa2   :  { %p2648_p5 = pnand %p2647_p4, %p2641_p1 }
 0x10b   :  { %v3046_v11 = vpop.f32.mrf.mxu0  ;;  %v3048_v38 = vpop.f32.mrf.mxu1 }
 0x10d   :  { %v3053_v52 = vpop.f32.mrf.mxu0  ;;  %v3055_v1 = vpop.f32.mrf.mxu1 }
 0x111   :  { %v235_v20 = vpop.f32.mrf.mxu0  ;;  %v348_v62 = vpop.f32.mrf.mxu1 }
 0x112   :  { %v3061_v59 = vadd.f32 %v235_v20, %v146_v63  ;;  %v3064_v58 = vadd.f32 %v348_v62, %v3057_v4 }
 0x113   :  { %v237_v57 = vpop.f32.mrf.mxu0  ;;  %v350_v55 = vpop.f32.mrf.mxu1 }
 0x114   :  { %3753 = vst [vmem:[#allocation39_spill] sm:$0xff] %v3061_v59  ;;  %3754 = vst [vmem:[#allocation40_spill] sm:$0xff] %v3064_v58  ;;  %v3066_v54 = vadd.f32 %v237_v57, %v150_v61  ;;  %v3069_v53 = vadd.f32 %v350_v55, %v3059_v60 }
 0x116   :  { %3755 = vst [vmem:[#allocation41_spill] sm:$0xff] %v3066_v54  ;;  %3756 = vst [vmem:[#allocation42_spill] sm:$0xff] %v3069_v53 }
 0x117   :  { %v241_v29 = vpop.f32.mrf.mxu0  ;;  %v354_v47 = vpop.f32.mrf.mxu1 }
 0x118   :  { %v3071_v56 = vadd.f32 %v241_v29, %v146_v63  ;;  %v3074_v2 = vadd.f32 %v354_v47, %v3057_v4 }
 0x119   :  { %v243_v0 = vpop.f32.mrf.mxu0  ;;  %v356_v3 = vpop.f32.mrf.mxu1 }
 0x11a   :  { %3757 = vst [vmem:[#allocation43_spill] sm:$0xff] %v3071_v56  ;;  %3758 = vst [vmem:[#allocation44_spill] sm:$0xff] %v3074_v2  ;;  %v3076_v20 = vadd.f32 %v243_v0, %v150_v61  ;;  %v3079_v62 = vadd.f32 %v356_v3, %v3059_v60 }
 0x11c   :  { %3759 = vst [vmem:[#allocation45_spill] sm:$0xff] %v3076_v20  ;;  %3760 = vst [vmem:[#allocation46_spill] sm:$0xff] %v3079_v62 }
 0x11d   :  { %v247_v58 = vpop.f32.mrf.mxu0  ;;  %v360_v57 = vpop.f32.mrf.mxu1 }
 0x11e   :  { %v3081_v54 = vadd.f32 %v247_v58, %v146_v63  ;;  %v3084_v55 = vadd.f32 %v360_v57, %v3057_v4 }
 0x11f   :  { %v249_v53 = vpop.f32.mrf.mxu0  ;;  %v362_v29 = vpop.f32.mrf.mxu1 }
 0x120   :  { %3761 = vst [vmem:[#allocation47_spill] sm:$0xff] %v3081_v54  ;;  %3762 = vst [vmem:[#allocation48_spill] sm:$0xff] %v3084_v55  ;;  %v3086_v56 = vadd.f32 %v249_v53, %v150_v61  ;;  %v3089_v47 = vadd.f32 %v362_v29, %v3059_v60 }
 0x122   :  { %3763 = vst [vmem:[#allocation49_spill] sm:$0xff] %v3086_v56  ;;  %3764 = vst [vmem:[#allocation50_spill] sm:$0xff] %v3089_v47 }
 0x123   :  { %v253_v2 = vpop.f32.mrf.mxu0  ;;  %v366_v0 = vpop.f32.mrf.mxu1 }
 0x124   :  { %v3091_v20 = vadd.f32 %v253_v2, %v146_v63  ;;  %v3094_v3 = vadd.f32 %v366_v0, %v3057_v4 }
 0x125   :  { %v255_v62 = vpop.f32.mrf.mxu0  ;;  %v368_v58 = vpop.f32.mrf.mxu1 }
 0x126   :  { %3765 = vst [vmem:[#allocation51_spill] sm:$0xff] %v3091_v20  ;;  %3766 = vst [vmem:[#allocation52_spill] sm:$0xff] %v3094_v3  ;;  %v3096_v54 = vadd.f32 %v255_v62, %v150_v61  ;;  %v3099_v57 = vadd.f32 %v368_v58, %v3059_v60 }
 0x128   :  { %3767 = vst [vmem:[#allocation53_spill] sm:$0xff] %v3096_v54  ;;  %3768 = vst [vmem:[#allocation54_spill] sm:$0xff] %v3099_v57 }
 0x129   :  { %v259_v55 = vpop.f32.mrf.mxu0  ;;  %v372_v53 = vpop.f32.mrf.mxu1 }
 0x12a   :  { %v3101_v56 = vadd.f32 %v259_v55, %v146_v63  ;;  %v3104_v29 = vadd.f32 %v372_v53, %v3057_v4 }
 0x12b   :  { %v261_v47 = vpop.f32.mrf.mxu0  ;;  %v374_v2 = vpop.f32.mrf.mxu1 }
 0x12c   :  { %3769 = vst [vmem:[#allocation55_spill] sm:$0xff] %v3101_v56  ;;  %3770 = vst [vmem:[#allocation56_spill] sm:$0xff] %v3104_v29  ;;  %v3106_v20 = vadd.f32 %v261_v47, %v150_v61  ;;  %v3109_v0 = vadd.f32 %v374_v2, %v3059_v60 }
 0x12e   :  { %3771 = vst [vmem:[#allocation57_spill] sm:$0xff] %v3106_v20  ;;  %3772 = vst [vmem:[#allocation58_spill] sm:$0xff] %v3109_v0 }
 0x12f   :  { %v265_v3 = vpop.f32.mrf.mxu0  ;;  %v378_v62 = vpop.f32.mrf.mxu1 }
 0x130   :  { %v3111_v54 = vadd.f32 %v265_v3, %v146_v63  ;;  %v3114_v58 = vadd.f32 %v378_v62, %v3057_v4 }
 0x131   :  { %v267_v57 = vpop.f32.mrf.mxu0  ;;  %v380_v55 = vpop.f32.mrf.mxu1 }
 0x132   :  { %3773 = vst [vmem:[#allocation59_spill] sm:$0xff] %v3111_v54  ;;  %3774 = vst [vmem:[#allocation60_spill] sm:$0xff] %v3114_v58  ;;  %v3116_v56 = vadd.f32 %v267_v57, %v150_v61  ;;  %v3119_v53 = vadd.f32 %v380_v55, %v3059_v60  ;;  %v230_v57 = vadd.f32 %v3046_v11, %v146_v63 }
 0x133   :  { %v232_v55 = vadd.f32 %v3053_v52, %v150_v61 }
 0x134   :  { %3775 = vst [vmem:[#allocation61_spill] sm:$0xff] %v3116_v56  ;;  %3776 = vst [vmem:[#allocation62_spill] sm:$0xff] %v3119_v53 }
 0x135   :  { %v271_v29 = vpop.f32.mrf.mxu0  ;;  %v384_v47 = vpop.f32.mrf.mxu1 }
 0x136   :  { %v3121_v20 = vadd.f32 %v271_v29, %v146_v63  ;;  %v3124_v2 = vadd.f32 %v384_v47, %v3057_v4 }
 0x137   :  { %v273_v0 = vpop.f32.mrf.mxu0  ;;  %v386_v3 = vpop.f32.mrf.mxu1 }
 0x138   :  { %3777 = vst [vmem:[#allocation63_spill] sm:$0xff] %v3121_v20  ;;  %3778 = vst [vmem:[#allocation64_spill] sm:$0xff] %v3124_v2  ;;  %v3126_v54 = vadd.f32 %v273_v0, %v150_v61  ;;  %v3129_v62 = vadd.f32 %v386_v3, %v3059_v60  ;;  %v345_v0 = vadd.f32 %v3055_v1, %v3059_v60 }
 0x139   :  { %v343_v3 = vadd.f32 %v3048_v38, %v3057_v4 }
 0x13a   :  { %3779 = vst [vmem:[#allocation65_spill] sm:$0xff] %v3126_v54  ;;  %3780 = vst [vmem:[#allocation66_spill] sm:$0xff] %v3129_v62 }
 0x13b   :  { %v557_v58 = vpop.f32.mrf.mxu0  ;;  %v628_v20 = vpop.f32.mrf.mxu1 }
 0x13c   :  { %v633_v53 = vadd.f32 %v557_v58, %v230_v57  ;;  %v635_v62 = vadd.f32 %v628_v20, %v343_v3 }
 0x13d   :  { %v559_v56 = vpop.f32.mrf.mxu0  ;;  %v630_v2 = vpop.f32.mrf.mxu1 }
 0x13e   :  { %v2417_v59 = vmul.f32 -1.442695, %v633_v53  ;;  %v634_v29 = vadd.f32 %v559_v56, %v232_v55  ;;  %v636_v54 = vadd.f32 %v630_v2, %v345_v0 }
 0x140   :  { %2452 = vpow2.f32 %v2417_v59  ;;  %v2418_v47 = vmul.f32 -1.442695, %v634_v29  ;;  %v2419_v63 = vmul.f32 -1.442695, %v636_v54 }
 0x142   :  { %2454 = vpow2.f32 %v2418_v47 }
 0x143   :  { %2456 = vpow2.f32 %v2419_v63 }
 0x14d   :  { %v2453_v11 = vpop.eup %2452 }
 0x14e   :  { %v640_v52 = vadd.f32 1.0, %v2453_v11 }
 0x14f   :  { %v2455_v61 = vpop.eup %2454 }
 0x150   :  { %2458 = vrcp.f32 %v640_v52  ;;  %v646_v56 = vadd.f32 1.0, %v2455_v61  ;;  %v2457_v59 = vpop.eup %2456  ;;  %v3214_v61 = vld [vmem:[#allocation10 + $0x1e8] sm:$0xff] }
 0x151   :  { %2460 = vtanh.f32 %v635_v62  ;;  %v653_v55 = vadd.f32 1.0, %v2457_v59  ;;  %v3220_v59 = vld [vmem:[#allocation10 + $0x1e0] sm:$0xff] }
 0x152   :  { %2462 = vrcp.f32 %v646_v56  ;;  %v3216_v56 = vld [vmem:[#allocation10 + $0x1f8] sm:$0xff] }
 0x153   :  { %2464 = vrcp.f32 %v653_v55  ;;  %v3232_v55 = vld [vmem:[#allocation10 + $0x1c0] sm:$0xff] }
 0x15d   :  { %v2459_v58 = vpop.eup %2458 }
 0x15e   :  { %v2461_v53 = vpop.eup %2460 }
 0x15f   :  { %v2463_v57 = vpop.eup %2462  ;;  %v657_v1 = vmul.f32 %v2461_v53, %v2459_v58  ;;  %v3222_v58 = vld [vmem:[#allocation10 + $0x1f0] sm:$0xff]  ;;  %v3226_v53 = vld [vmem:[#allocation10 + $0x1c8] sm:$0xff] }
 0x160   :  { %v656_v60 = vmul.f32 0.0, %v2463_v57  ;;  %v2465_v54 = vpop.eup %2464  ;;  %v3228_v57 = vld [vmem:[#allocation10 + $0x1d8] sm:$0xff] }
 0x162   :  { %v3137_v2 = vadd.f32 %v657_v1, %v656_v60  ;;  %v3234_v60 = vld [vmem:[#allocation10 + $0x1d0] sm:$0xff]  ;;  %v3238_v1 = vld [vmem:[#allocation10 + $0x1a8] sm:$0xff] }
 0x164   :  { %2466 = vtanh.f32 %v3137_v2 }
 0x171   :  { %v2467_v38 = vpop.eup %2466 }
 0x172   :  { %v660_v4 = vmul.f32 %v2467_v38, %v2465_v54  ;;  %v3244_v54 = vld [vmem:[#allocation10 + $0x1a0] sm:$0xff]  ;;  %v3246_v38 = vld [vmem:[#allocation10 + $0x1b0] sm:$0xff] }
 0x174   :  { %663 = vst [vmem:[#allocation11] sm:$0xff] %v660_v4  ;;  %799 = vmatmul.mubr.f32.vlgmr.msra.gmra.mxu0 %v660_v4  ;;  %870 = vmatmul.mubr.f32.vlgmr.msra.gmra.mxu1 %v660_v4  ;;  %v3250_v4 = vld [vmem:[#allocation10 + $0x188] sm:$0xff] }
 0x175   :  { %978 = vmatpush1.msra.mxu0 %v2772_v5  ;;  %1049 = vmatpush1.msra.mxu1 %v2774_v6  ;;  %v3781_v5 = vld [vmem:[#allocation19_spill] sm:$0xff]  ;;  %v3782_v6 = vld [vmem:[#allocation20_spill] sm:$0xff] }
 0x176   :  { %979 = vmatprep.subr.mxu0 %v2776_v7  ;;  %1050 = vmatprep.subr.mxu1 %v2778_v8  ;;  %v3783_v7 = vld [vmem:[#allocation21_spill] sm:$0xff]  ;;  %v3784_v8 = vld [vmem:[#allocation22_spill] sm:$0xff]  ;;  %3806 = vst [vmem:[#allocation19_spill] sm:$0xff] %v3214_v61  ;;  %3807 = vst [vmem:[#allocation20_spill] sm:$0xff] %v3216_v56 }
 0x177   :  { %980 = vmatpush1.msra.mxu0 %v2784_v9  ;;  %1051 = vmatpush1.msra.mxu1 %v2786_v10  ;;  %v3785_v9 = vld [vmem:[#allocation23_spill] sm:$0xff]  ;;  %v3786_v10 = vld [vmem:[#allocation24_spill] sm:$0xff] }
 0x178   :  { %981 = vmatprep.subr.mxu0 %v2792_v12  ;;  %1052 = vmatprep.subr.mxu1 %v2794_v13  ;;  %v3787_v12 = vld [vmem:[#allocation25_spill] sm:$0xff]  ;;  %v3788_v13 = vld [vmem:[#allocation26_spill] sm:$0xff] }
 0x179   :  { %982 = vmatpush1.msra.mxu0 %v2798_v14  ;;  %1053 = vmatpush1.msra.mxu1 %v2800_v15  ;;  %v3789_v14 = vld [vmem:[#allocation27_spill] sm:$0xff]  ;;  %v3790_v15 = vld [vmem:[#allocation28_spill] sm:$0xff] }
 0x17a   :  { %983 = vmatprep.subr.mxu0 %v2802_v16  ;;  %1054 = vmatprep.subr.mxu1 %v2804_v17  ;;  %v3791_v16 = vld [vmem:[#allocation29_spill] sm:$0xff]  ;;  %v3792_v17 = vld [vmem:[#allocation30_spill] sm:$0xff] }
 0x17b   :  { %984 = vmatpush1.msra.mxu0 %v2810_v18  ;;  %1055 = vmatpush1.msra.mxu1 %v2812_v19  ;;  %v3793_v18 = vld [vmem:[#allocation31_spill] sm:$0xff]  ;;  %v3794_v19 = vld [vmem:[#allocation32_spill] sm:$0xff] }
 0x17c   :  { %985 = vmatprep.subr.mxu0 %v2818_v21  ;;  %1056 = vmatprep.subr.mxu1 %v2820_v22  ;;  %v3795_v21 = vld [vmem:[#allocation33_spill] sm:$0xff]  ;;  %v3796_v22 = vld [vmem:[#allocation34_spill] sm:$0xff] }
 0x17d   :  { %986 = vmatpush1.msra.mxu0 %v2824_v23  ;;  %1057 = vmatpush1.msra.mxu1 %v2826_v24  ;;  %v3797_v23 = vld [vmem:[#allocation35_spill] sm:$0xff]  ;;  %v3798_v24 = vld [vmem:[#allocation36_spill] sm:$0xff] }
 0x17e   :  { %987 = vmatprep.subr.mxu0 %v2828_v25  ;;  %1058 = vmatprep.subr.mxu1 %v2830_v26  ;;  %v3799_v25 = vld [vmem:[#allocation37_spill] sm:$0xff]  ;;  %v3800_v26 = vmov 0.0  }
 0x17f   :  { %988 = vmatpush1.msra.mxu0 %v2836_v27  ;;  %1059 = vmatpush1.msra.mxu1 %v2838_v28  ;;  %v3801_v27 = vld [vmem:[#allocation38_spill] sm:$0xff] }
 0x180   :  { %989 = vmatprep.subr.mxu0 %v2844_v30  ;;  %1060 = vmatprep.subr.mxu1 %v2846_v31  ;;  %v3802_v30 = vld [vmem:[#allocation39_spill] sm:$0xff] }
 0x181   :  { %990 = vmatpush1.msra.mxu0 %v2850_v32  ;;  %1061 = vmatpush1.msra.mxu1 %v2852_v33 }
 0x182   :  { %991 = vmatprep.subr.mxu0 %v2854_v34  ;;  %1062 = vmatprep.subr.mxu1 %v2856_v35  ;;  %v3803_v34 = vld [vmem:[#allocation41_spill] sm:$0xff] }
 0x183   :  { %992 = vmatpush1.msra.mxu0 %v2862_v36  ;;  %1063 = vmatpush1.msra.mxu1 %v2864_v37 }
 0x184   :  { %993 = vmatprep.subr.mxu0 %v2870_v39  ;;  %1064 = vmatprep.subr.mxu1 %v2872_v40  ;;  %v3804_v40 = vld [vmem:[#allocation42_spill] sm:$0xff] }
 0x185   :  { %994 = vmatpush1.msra.mxu0 %v2876_v41  ;;  %1065 = vmatpush1.msra.mxu1 %v2878_v42  ;;  %v3805_v42 = vld [vmem:[#allocation40_spill] sm:$0xff] }
 0x186   :  { %995 = vmatprep.subr.mxu0 %v2880_v43  ;;  %1066 = vmatprep.subr.mxu1 %v2882_v44 }
 0x187   :  { %996 = vmatpush1.msra.mxu0 %v2888_v45  ;;  %1067 = vmatpush1.msra.mxu1 %v2890_v46 }
 0x188   :  { %997 = vmatprep.subr.mxu0 %v2896_v48  ;;  %1068 = vmatprep.subr.mxu1 %v2898_v49 }
 0x189   :  { %998 = vmatpush1.msra.mxu0 %v2902_v50  ;;  %1069 = vmatpush1.msra.mxu1 %v2904_v51 }
 0x18a   :  { %999 = vmatprep.subr.mxu0 %v3781_v5  ;;  %1070 = vmatprep.subr.mxu1 %v3782_v6  ;;  %v3252_v5 = vld [vmem:[#allocation10 + $0x198] sm:$0xff]  ;;  %v3256_v6 = vld [vmem:[#allocation10 + $0x180] sm:$0xff] }
 0x18b   :  { %1000 = vmatpush1.msra.mxu0 %v3783_v7  ;;  %1071 = vmatpush1.msra.mxu1 %v3784_v8  ;;  %v3258_v7 = vld [vmem:[#allocation10 + $0x190] sm:$0xff]  ;;  %v3262_v8 = vld [vmem:[#allocation10 + $0x168] sm:$0xff] }
 0x18c   :  { %1001 = vmatprep.subr.mxu0 %v3785_v9  ;;  %1072 = vmatprep.subr.mxu1 %v3786_v10  ;;  %v3264_v9 = vld [vmem:[#allocation10 + $0x178] sm:$0xff]  ;;  %v3268_v10 = vld [vmem:[#allocation10 + $0x160] sm:$0xff] }
 0x18d   :  { %1002 = vmatpush1.msra.mxu0 %v3787_v12  ;;  %1073 = vmatpush1.msra.mxu1 %v3788_v13  ;;  %v3270_v12 = vld [vmem:[#allocation10 + $0x170] sm:$0xff]  ;;  %v3274_v13 = vld [vmem:[#allocation10 + $0x148] sm:$0xff] }
 0x18e   :  { %1003 = vmatprep.subr.mxu0 %v3789_v14  ;;  %1074 = vmatprep.subr.mxu1 %v3790_v15  ;;  %v3276_v14 = vld [vmem:[#allocation10 + $0x158] sm:$0xff]  ;;  %v3280_v15 = vld [vmem:[#allocation10 + $0x140] sm:$0xff] }
 0x18f   :  { %1004 = vmatpush1.msra.mxu0 %v3791_v16  ;;  %1075 = vmatpush1.msra.mxu1 %v3792_v17  ;;  %v3282_v16 = vld [vmem:[#allocation10 + $0x150] sm:$0xff]  ;;  %v3286_v17 = vld [vmem:[#allocation10 + $0x128] sm:$0xff] }
 0x190   :  { %1005 = vmatprep.subr.mxu0 %v3793_v18  ;;  %1076 = vmatprep.subr.mxu1 %v3794_v19  ;;  %v3288_v18 = vld [vmem:[#allocation10 + $0x138] sm:$0xff]  ;;  %v3292_v19 = vld [vmem:[#allocation10 + $0x120] sm:$0xff] }
 0x191   :  { %1006 = vmatpush1.msra.mxu0 %v3795_v21  ;;  %1077 = vmatpush1.msra.mxu1 %v3796_v22  ;;  %v3294_v21 = vld [vmem:[#allocation10 + $0x130] sm:$0xff]  ;;  %v3298_v22 = vld [vmem:[#allocation10 + $0x108] sm:$0xff] }
 0x192   :  { %1007 = vmatprep.subr.mxu0 %v3797_v23  ;;  %1078 = vmatprep.subr.mxu1 %v3798_v24  ;;  %v3300_v23 = vld [vmem:[#allocation10 + $0x118] sm:$0xff]  ;;  %v3302_v24 = vld [vmem:[#allocation10 + $0x100] sm:$0xff] }
 0x193   :  { %1008 = vmatpush1.msra.mxu0 %v3799_v25  ;;  %1041 = vmatprep.mubr.f32.mxu0 %v3800_v26  ;;  %v3306_v25 = vld [vmem:[#allocation10 + $0x110] sm:$0xff] }
 0x194   :  { %1079 = vmatpush1.msra.mxu1 %v3801_v27  ;;  %1112 = vmatprep.mubr.f32.mxu1 %v3800_v26  ;;  %v3308_v27 = vld [vmem:[#allocation10 + $0xe8] sm:$0xff] }
 0x195   :  { %1220 = vmatprep.subr.mxu0 %v3214_v61  ;;  %1291 = vmatprep.subr.mxu1 %v3216_v56 }
 0x234   :  { %v800_v28 = vpop.f32.mrf.mxu0  ;;  %v871_v36 = vpop.f32.mrf.mxu1 }
 0x235   :  { %v876_v31 = vadd.f32 %v800_v28, %v3802_v30  ;;  %v878_v43 = vadd.f32 %v871_v36, %v3805_v42  ;;  %v3310_v28 = vld [vmem:[#allocation10 + $0xf8] sm:$0xff]  ;;  %v3314_v30 = vld [vmem:[#allocation10 + $0xe0] sm:$0xff]  ;;  %v3330_v36 = vld [vmem:[#allocation10 + $0xa8] sm:$0xff] }
 0x236   :  { %v802_v32 = vpop.f32.mrf.mxu0  ;;  %v873_v39 = vpop.f32.mrf.mxu1  ;;  %v3344_v42 = vld [vmem:[#allocation10 + $0x98] sm:$0xff] }
 0x237   :  { %v2420_v33 = vmul.f32 -1.442695, %v876_v31  ;;  %v877_v35 = vadd.f32 %v802_v32, %v3803_v34  ;;  %v879_v41 = vadd.f32 %v873_v39, %v3804_v40  ;;  %v3316_v31 = vld [vmem:[#allocation10 + $0xf0] sm:$0xff]  ;;  %v3318_v32 = vld [vmem:[#allocation10 + $0xc8] sm:$0xff]  ;;  %v3324_v34 = vld [vmem:[#allocation10 + $0xc0] sm:$0xff] }
 0x238   :  { %v3336_v39 = vld [vmem:[#allocation10 + $0xa0] sm:$0xff]  ;;  %v3338_v40 = vld [vmem:[#allocation10 + $0xb0] sm:$0xff] }
 0x239   :  { %2468 = vpow2.f32 %v2420_v33  ;;  %v2421_v37 = vmul.f32 -1.442695, %v877_v35  ;;  %v2422_v44 = vmul.f32 -1.442695, %v879_v41  ;;  %v3322_v33 = vld [vmem:[#allocation10 + $0xd8] sm:$0xff]  ;;  %v3326_v35 = vld [vmem:[#allocation10 + $0xd0] sm:$0xff] }
 0x23a   :  { %v3342_v41 = vld [vmem:[#allocation10 + $0x88] sm:$0xff] }
 0x23b   :  { %2470 = vpow2.f32 %v2421_v37  ;;  %v3332_v37 = vld [vmem:[#allocation10 + $0xb8] sm:$0xff] }
 0x23c   :  { %2472 = vtanh.f32 %v878_v43  ;;  %v3348_v43 = vld [vmem:[#allocation10 + $0x80] sm:$0xff] }
 0x23d   :  { %2474 = vpow2.f32 %v2422_v44  ;;  %v3350_v44 = vld [vmem:[#allocation10 + $0x90] sm:$0xff] }
 0x23e   :  { %3808 = vst [vmem:[#allocation21_spill] sm:$0xff] %v3350_v44 }
 0x246   :  { %v2469_v45 = vpop.eup %2468 }
 0x247   :  { %v883_v46 = vadd.f32 1.0, %v2469_v45  ;;  %v3354_v45 = vld [vmem:[#allocation10 + $0x68] sm:$0xff] }
 0x248   :  { %v2471_v48 = vpop.eup %2470  ;;  %3809 = vst [vmem:[#allocation22_spill] sm:$0xff] %v3354_v45 }
 0x249   :  { %2476 = vrcp.f32 %v883_v46  ;;  %v889_v49 = vadd.f32 1.0, %v2471_v48  ;;  %v2473_v50 = vpop.eup %2472  ;;  %v3356_v46 = vld [vmem:[#allocation10 + $0x78] sm:$0xff]  ;;  %v3360_v48 = vld [vmem:[#allocation10 + $0x60] sm:$0xff] }
 0x24a   :  { %v2475_v51 = vpop.eup %2474  ;;  %3810 = vst [vmem:[#allocation23_spill] sm:$0xff] %v3356_v46  ;;  %3811 = vst [vmem:[#allocation24_spill] sm:$0xff] %v3360_v48 }
 0x24b   :  { %2478 = vrcp.f32 %v889_v49  ;;  %v896_v47 = vadd.f32 1.0, %v2475_v51  ;;  %v3362_v49 = vld [vmem:[#allocation10 + $0x70] sm:$0xff]  ;;  %v3368_v51 = vld [vmem:[#allocation10 + $0x58] sm:$0xff] }
 0x24c   :  { %3812 = vst [vmem:[#allocation25_spill] sm:$0xff] %v3362_v49  ;;  %3814 = vst [vmem:[#allocation27_spill] sm:$0xff] %v3368_v51 }
 0x24d   :  { %2480 = vrcp.f32 %v896_v47  ;;  %v3380_v47 = vld [vmem:[#allocation10 + $0x38] sm:$0xff] }
 0x24e   :  { %3818 = vst [vmem:[#allocation31_spill] sm:$0xff] %v3380_v47 }
 0x256   :  { %v2477_v20 = vpop.eup %2476 }
 0x257   :  { %v900_v62 = vmul.f32 %v2477_v20, %v2473_v50  ;;  %v3366_v50 = vld [vmem:[#allocation10 + $0x48] sm:$0xff]  ;;  %v3372_v20 = vld [vmem:[#allocation10 + $0x40] sm:$0xff] }
 0x258   :  { %v2479_v29 = vpop.eup %2478  ;;  %3813 = vst [vmem:[#allocation26_spill] sm:$0xff] %v3366_v50  ;;  %3815 = vst [vmem:[#allocation28_spill] sm:$0xff] %v3372_v20 }
 0x259   :  { %v899_v0 = vmul.f32 %v2479_v29, %v3137_v2  ;;  %v3240_v2 = vld [vmem:[#allocation10 + $0x1b8] sm:$0xff]  ;;  %v3378_v29 = vld [vmem:[#allocation10 + $0x28] sm:$0xff] }
 0x25a   :  { %v2481_v63 = vpop.eup %2480  ;;  %3817 = vst [vmem:[#allocation30_spill] sm:$0xff] %v3378_v29 }
 0x25b   :  { %v3209_v3 = vadd.f32 %v900_v62, %v899_v0  ;;  %v3374_v62 = vld [vmem:[#allocation10 + $0x50] sm:$0xff]  ;;  %v3384_v0 = vld [vmem:[#allocation10 + $0x20] sm:$0xff] }
 0x25c   :  { %3816 = vst [vmem:[#allocation29_spill] sm:$0xff] %v3374_v62  ;;  %3819 = vst [vmem:[#allocation32_spill] sm:$0xff] %v3384_v0 }
 0x25d   :  { %2482 = vtanh.f32 %v3209_v3 }
 0x26a   :  { %v2483_v11 = vpop.eup %2482 }
 0x26b   :  { %v903_v52 = vmul.f32 %v2483_v11, %v2481_v63  ;;  %v3386_v63 = vld [vmem:[#allocation10 + $0x30] sm:$0xff]  ;;  %v3390_v11 = vld [vmem:[#allocation10 + $0x8] sm:$0xff] }
 0x26c   :  { %3820 = vst [vmem:[#allocation33_spill] sm:$0xff] %v3386_v63  ;;  %3821 = vst [vmem:[#allocation34_spill] sm:$0xff] %v3390_v11 }
 0x26d   :  { %906 = vst [vmem:[#allocation11 + $0x8] sm:$0xff] %v903_v52  ;;  %1042 = vmatmul.mubr.f32.vlgmr.msra.gmra.mxu0 %v903_v52  ;;  %1113 = vmatmul.mubr.f32.vlgmr.msra.gmra.mxu1 %v903_v52  ;;  %v3392_v52 = vld [vmem:[#allocation10 + $0x18] sm:$0xff] }
 0x26e   :  { %1284 = vmatprep.mubr.f32.mxu0 %v3800_v26  ;;  %1355 = vmatprep.mubr.f32.mxu1 %v3800_v26  ;;  %3822 = vst [vmem:[#allocation35_spill] sm:$0xff] %v3392_v52  ;;  %v3396_v26 = vld [vmem:[#allocation10] sm:$0xff] }
 0x26f   :  { %1221 = vmatpush1.msra.mxu0 %v3220_v59  ;;  %1292 = vmatpush1.msra.mxu1 %v3222_v58  ;;  %3823 = vst [vmem:[#allocation36_spill] sm:$0xff] %v3396_v26 }
 0x270   :  { %1222 = vmatprep.subr.mxu0 %v3226_v53  ;;  %1293 = vmatprep.subr.mxu1 %v3228_v57 }
 0x271   :  { %1223 = vmatpush1.msra.mxu0 %v3232_v55  ;;  %1294 = vmatpush1.msra.mxu1 %v3234_v60 }
 0x272   :  { %1224 = vmatprep.subr.mxu0 %v3238_v1  ;;  %1295 = vmatprep.subr.mxu1 %v3240_v2 }
 0x273   :  { %1225 = vmatpush1.msra.mxu0 %v3244_v54  ;;  %1296 = vmatpush1.msra.mxu1 %v3246_v38 }
 0x274   :  { %1226 = vmatprep.subr.mxu0 %v3250_v4  ;;  %1297 = vmatprep.subr.mxu1 %v3252_v5 }
 0x275   :  { %1227 = vmatpush1.msra.mxu0 %v3256_v6  ;;  %1298 = vmatpush1.msra.mxu1 %v3258_v7 }
 0x276   :  { %1228 = vmatprep.subr.mxu0 %v3262_v8  ;;  %1299 = vmatprep.subr.mxu1 %v3264_v9 }
 0x277   :  { %1229 = vmatpush1.msra.mxu0 %v3268_v10  ;;  %1300 = vmatpush1.msra.mxu1 %v3270_v12 }
 0x278   :  { %1230 = vmatprep.subr.mxu0 %v3274_v13  ;;  %1301 = vmatprep.subr.mxu1 %v3276_v14 }
 0x279   :  { %1231 = vmatpush1.msra.mxu0 %v3280_v15  ;;  %1302 = vmatpush1.msra.mxu1 %v3282_v16 }
 0x27a   :  { %1232 = vmatprep.subr.mxu0 %v3286_v17  ;;  %1303 = vmatprep.subr.mxu1 %v3288_v18 }
 0x27b   :  { %1233 = vmatpush1.msra.mxu0 %v3292_v19  ;;  %1304 = vmatpush1.msra.mxu1 %v3294_v21 }
 0x27c   :  { %1234 = vmatprep.subr.mxu0 %v3298_v22  ;;  %1305 = vmatprep.subr.mxu1 %v3300_v23 }
 0x27d   :  { %1235 = vmatpush1.msra.mxu0 %v3302_v24  ;;  %1306 = vmatpush1.msra.mxu1 %v3306_v25 }
 0x27e   :  { %1236 = vmatprep.subr.mxu0 %v3308_v27  ;;  %1307 = vmatprep.subr.mxu1 %v3310_v28 }
 0x27f   :  { %1237 = vmatpush1.msra.mxu0 %v3314_v30  ;;  %1308 = vmatpush1.msra.mxu1 %v3316_v31 }
 0x280   :  { %1238 = vmatprep.subr.mxu0 %v3318_v32  ;;  %1309 = vmatprep.subr.mxu1 %v3322_v33 }
 0x281   :  { %1239 = vmatpush1.msra.mxu0 %v3324_v34  ;;  %1310 = vmatpush1.msra.mxu1 %v3326_v35 }
 0x282   :  { %1240 = vmatprep.subr.mxu0 %v3330_v36  ;;  %1311 = vmatprep.subr.mxu1 %v3332_v37 }
 0x283   :  { %1241 = vmatpush1.msra.mxu0 %v3336_v39  ;;  %1312 = vmatpush1.msra.mxu1 %v3338_v40 }
 0x284   :  { %1242 = vmatprep.subr.mxu0 %v3342_v41  ;;  %1313 = vmatprep.subr.mxu1 %v3344_v42 }
 0x285   :  { %1243 = vmatpush1.msra.mxu0 %v3348_v43  ;;  %1314 = vmatpush1.msra.mxu1 %v3350_v44 }
 0x286   :  { %1244 = vmatprep.subr.mxu0 %v3354_v45  ;;  %1315 = vmatprep.subr.mxu1 %v3356_v46  ;;  %v3828_v46 = vld [vmem:[#allocation44_spill] sm:$0xff] }
 0x287   :  { %1245 = vmatpush1.msra.mxu0 %v3360_v48  ;;  %1316 = vmatpush1.msra.mxu1 %v3362_v49  ;;  %v3827_v48 = vld [vmem:[#allocation46_spill] sm:$0xff] }
 0x288   :  { %1246 = vmatprep.subr.mxu0 %v3366_v50  ;;  %1317 = vmatprep.subr.mxu1 %v3368_v51  ;;  %v3398_v50 = vld [vmem:[#allocation10 + $0x10] sm:$0xff] }
 0x289   :  { %1247 = vmatpush1.msra.mxu0 %v3372_v20  ;;  %1318 = vmatpush1.msra.mxu1 %v3374_v62  ;;  %3824 = vst [vmem:[#allocation37_spill] sm:$0xff] %v3398_v50 }
 0x28a   :  { %1248 = vmatprep.subr.mxu0 %v3378_v29  ;;  %1319 = vmatprep.subr.mxu1 %v3380_v47  ;;  %v3825_v29 = vld [vmem:[#allocation43_spill] sm:$0xff] }
 0x28b   :  { %1249 = vmatpush1.msra.mxu0 %v3384_v0  ;;  %1320 = vmatpush1.msra.mxu1 %v3386_v63  ;;  %v3826_v0 = vld [vmem:[#allocation45_spill] sm:$0xff] }
 0x28c   :  { %1250 = vmatprep.subr.mxu0 %v3390_v11  ;;  %1321 = vmatprep.subr.mxu1 %v3392_v52 }
 0x28d   :  { %1251 = vmatpush1.msra.mxu0 %v3396_v26  ;;  %1322 = vmatpush1.msra.mxu1 %v3398_v50 }
 0x28e   :  { %1463 = vmatprep.subr.mxu0 %v3214_v61  ;;  %1534 = vmatprep.subr.mxu1 %v3216_v56 }
 0x32d   :  { %v1043_v47 = vpop.f32.mrf.mxu0  ;;  %v1114_v63 = vpop.f32.mrf.mxu1 }
 0x32e   :  { %v1119_v62 = vadd.f32 %v1043_v47, %v3825_v29  ;;  %v1121_v50 = vadd.f32 %v1114_v63, %v3828_v46  ;;  %v3834_v63 = vld [vmem:[#allocation26_spill] sm:$0xff] }
 0x32f   :  { %v1045_v20 = vpop.f32.mrf.mxu0  ;;  %v1116_v52 = vpop.f32.mrf.mxu1 }
 0x330   :  { %v2423_v51 = vmul.f32 -1.442695, %v1119_v62  ;;  %v1120_v49 = vadd.f32 %v1045_v20, %v3826_v0  ;;  %v1122_v26 = vadd.f32 %v1116_v52, %v3827_v48  ;;  %v3835_v52 = vld [vmem:[#allocation27_spill] sm:$0xff] }
 0x332   :  { %2484 = vpow2.f32 %v2423_v51  ;;  %v2424_v11 = vmul.f32 -1.442695, %v1120_v49  ;;  %v2425_v45 = vmul.f32 -1.442695, %v1122_v26 }
 0x334   :  { %2486 = vpow2.f32 %v2424_v11 }
 0x335   :  { %2488 = vtanh.f32 %v1121_v50  ;;  %v3833_v50 = vld [vmem:[#allocation25_spill] sm:$0xff] }
 0x336   :  { %2490 = vpow2.f32 %v2425_v45  ;;  %v3832_v45 = vld [vmem:[#allocation24_spill] sm:$0xff] }
 0x33f   :  { %v2485_v61 = vpop.eup %2484 }
 0x340   :  { %v1126_v44 = vadd.f32 1.0, %v2485_v61 }
 0x341   :  { %v2487_v56 = vpop.eup %2486 }
 0x342   :  { %2492 = vrcp.f32 %v1126_v44  ;;  %v1132_v29 = vadd.f32 1.0, %v2487_v56  ;;  %v2489_v62 = vpop.eup %2488  ;;  %v3830_v56 = vld [vmem:[#allocation22_spill] sm:$0xff]  ;;  %v3831_v44 = vld [vmem:[#allocation23_spill] sm:$0xff] }
 0x343   :  { %v2491_v20 = vpop.eup %2490 }
 0x344   :  { %2494 = vrcp.f32 %v1132_v29  ;;  %v1139_v0 = vadd.f32 1.0, %v2491_v20  ;;  %v3836_v29 = vld [vmem:[#allocation28_spill] sm:$0xff]  ;;  %v3838_v20 = vld [vmem:[#allocation30_spill] sm:$0xff] }
 0x346   :  { %2496 = vrcp.f32 %v1139_v0  ;;  %v3842_v0 = vld [vmem:[#allocation34_spill] sm:$0xff] }
 0x34f   :  { %v2493_v51 = vpop.eup %2492 }
 0x350   :  { %v1143_v47 = vmul.f32 %v2493_v51, %v2489_v62  ;;  %v3837_v62 = vld [vmem:[#allocation29_spill] sm:$0xff]  ;;  %v3839_v51 = vld [vmem:[#allocation31_spill] sm:$0xff] }
 0x351   :  { %v2495_v49 = vpop.eup %2494 }
 0x352   :  { %v1142_v11 = vmul.f32 %v2495_v49, %v3209_v3  ;;  %v3829_v3 = vld [vmem:[#allocation21_spill] sm:$0xff] }
 0x353   :  { %v2497_v26 = vpop.eup %2496  ;;  %v3841_v49 = vld [vmem:[#allocation33_spill] sm:$0xff] }
 0x354   :  { %v3413_v48 = vadd.f32 %v1143_v47, %v1142_v11  ;;  %v3840_v47 = vld [vmem:[#allocation32_spill] sm:$0xff]  ;;  %v3843_v11 = vld [vmem:[#allocation35_spill] sm:$0xff] }
 0x356   :  { %2498 = vtanh.f32 %v3413_v48 }
 0x363   :  { %v2499_v61 = vpop.eup %2498 }
 0x364   :  { %v1146_v46 = vmul.f32 %v2499_v61, %v2497_v26  ;;  %v3844_v26 = vld [vmem:[#allocation36_spill] sm:$0xff]  ;;  %v3845_v61 = vmov 0.0  }
 0x366   :  { %1149 = vst [vmem:[#allocation11 + $0x10] sm:$0xff] %v1146_v46  ;;  %1285 = vmatmul.mubr.f32.vlgmr.msra.gmra.mxu0 %v1146_v46  ;;  %1356 = vmatmul.mubr.f32.vlgmr.msra.gmra.mxu1 %v1146_v46  ;;  %v3846_v46 = vld [vmem:[#allocation37_spill] sm:$0xff] }
 0x367   :  { %1464 = vmatpush1.msra.mxu0 %v3220_v59  ;;  %1535 = vmatpush1.msra.mxu1 %v3222_v58 }
 0x368   :  { %1465 = vmatprep.subr.mxu0 %v3226_v53  ;;  %1536 = vmatprep.subr.mxu1 %v3228_v57 }
 0x369   :  { %1466 = vmatpush1.msra.mxu0 %v3232_v55  ;;  %1537 = vmatpush1.msra.mxu1 %v3234_v60 }
 0x36a   :  { %1467 = vmatprep.subr.mxu0 %v3238_v1  ;;  %1538 = vmatprep.subr.mxu1 %v3240_v2 }
 0x36b   :  { %1468 = vmatpush1.msra.mxu0 %v3244_v54  ;;  %1539 = vmatpush1.msra.mxu1 %v3246_v38 }
 0x36c   :  { %1469 = vmatprep.subr.mxu0 %v3250_v4  ;;  %1540 = vmatprep.subr.mxu1 %v3252_v5 }
 0x36d   :  { %1470 = vmatpush1.msra.mxu0 %v3256_v6  ;;  %1541 = vmatpush1.msra.mxu1 %v3258_v7 }
 0x36e   :  { %1471 = vmatprep.subr.mxu0 %v3262_v8  ;;  %1542 = vmatprep.subr.mxu1 %v3264_v9 }
 0x36f   :  { %1472 = vmatpush1.msra.mxu0 %v3268_v10  ;;  %1543 = vmatpush1.msra.mxu1 %v3270_v12 }
 0x370   :  { %1473 = vmatprep.subr.mxu0 %v3274_v13  ;;  %1544 = vmatprep.subr.mxu1 %v3276_v14 }
 0x371   :  { %1474 = vmatpush1.msra.mxu0 %v3280_v15  ;;  %1545 = vmatpush1.msra.mxu1 %v3282_v16 }
 0x372   :  { %1475 = vmatprep.subr.mxu0 %v3286_v17  ;;  %1546 = vmatprep.subr.mxu1 %v3288_v18 }
 0x373   :  { %1476 = vmatpush1.msra.mxu0 %v3292_v19  ;;  %1547 = vmatpush1.msra.mxu1 %v3294_v21 }
 0x374   :  { %1477 = vmatprep.subr.mxu0 %v3298_v22  ;;  %1548 = vmatprep.subr.mxu1 %v3300_v23 }
 0x375   :  { %1478 = vmatpush1.msra.mxu0 %v3302_v24  ;;  %1549 = vmatpush1.msra.mxu1 %v3306_v25 }
 0x376   :  { %1479 = vmatprep.subr.mxu0 %v3308_v27  ;;  %1550 = vmatprep.subr.mxu1 %v3310_v28 }
 0x377   :  { %1480 = vmatpush1.msra.mxu0 %v3314_v30  ;;  %1551 = vmatpush1.msra.mxu1 %v3316_v31 }
 0x378   :  { %1481 = vmatprep.subr.mxu0 %v3318_v32  ;;  %1552 = vmatprep.subr.mxu1 %v3322_v33 }
 0x379   :  { %1482 = vmatpush1.msra.mxu0 %v3324_v34  ;;  %1553 = vmatpush1.msra.mxu1 %v3326_v35 }
 0x37a   :  { %1483 = vmatprep.subr.mxu0 %v3330_v36  ;;  %1554 = vmatprep.subr.mxu1 %v3332_v37 }
 0x37b   :  { %1484 = vmatpush1.msra.mxu0 %v3336_v39  ;;  %1555 = vmatpush1.msra.mxu1 %v3338_v40 }
 0x37c   :  { %1485 = vmatprep.subr.mxu0 %v3342_v41  ;;  %1556 = vmatprep.subr.mxu1 %v3344_v42 }
 0x37d   :  { %1486 = vmatpush1.msra.mxu0 %v3348_v43  ;;  %1557 = vmatpush1.msra.mxu1 %v3829_v3 }
 0x37e   :  { %1487 = vmatprep.subr.mxu0 %v3830_v56  ;;  %1558 = vmatprep.subr.mxu1 %v3831_v44  ;;  %v3852_v44 = vld [vmem:[#allocation48_spill] sm:$0xff] }
 0x37f   :  { %1488 = vmatpush1.msra.mxu0 %v3832_v45  ;;  %1559 = vmatpush1.msra.mxu1 %v3833_v50  ;;  %v3851_v45 = vld [vmem:[#allocation50_spill] sm:$0xff] }
 0x380   :  { %1489 = vmatprep.subr.mxu0 %v3834_v63  ;;  %1560 = vmatprep.subr.mxu1 %v3835_v52 }
 0x381   :  { %1490 = vmatpush1.msra.mxu0 %v3836_v29  ;;  %1561 = vmatpush1.msra.mxu1 %v3837_v62  ;;  %v3847_v62 = vld [vmem:[#allocation19_spill] sm:$0xff] }
 0x382   :  { %1491 = vmatprep.subr.mxu0 %v3838_v20  ;;  %1562 = vmatprep.subr.mxu1 %v3839_v51  ;;  %v3848_v20 = vld [vmem:[#allocation20_spill] sm:$0xff] }
 0x383   :  { %1492 = vmatpush1.msra.mxu0 %v3840_v47  ;;  %1563 = vmatpush1.msra.mxu1 %v3841_v49  ;;  %v3849_v47 = vld [vmem:[#allocation47_spill] sm:$0xff] }
 0x384   :  { %1493 = vmatprep.subr.mxu0 %v3842_v0  ;;  %1564 = vmatprep.subr.mxu1 %v3843_v11  ;;  %v3850_v0 = vld [vmem:[#allocation49_spill] sm:$0xff] }
 0x385   :  { %1494 = vmatpush1.msra.mxu0 %v3844_v26  ;;  %1527 = vmatprep.mubr.f32.mxu0 %v3845_v61 }
 0x386   :  { %1565 = vmatpush1.msra.mxu1 %v3846_v46  ;;  %1598 = vmatprep.mubr.f32.mxu1 %v3845_v61 }
 0x387   :  { %1706 = vmatprep.subr.mxu0 %v3847_v62  ;;  %1777 = vmatprep.subr.mxu1 %v3848_v20 }
 0x426   :  { %v1286_v51 = vpop.f32.mrf.mxu0  ;;  %v1357_v11 = vpop.f32.mrf.mxu1 }
 0x427   :  { %v1362_v29 = vadd.f32 %v1286_v51, %v3849_v47  ;;  %v1364_v61 = vadd.f32 %v1357_v11, %v3852_v44  ;;  %v3857_v11 = vld [vmem:[#allocation25_spill] sm:$0xff] }
 0x428   :  { %v1288_v49 = vpop.f32.mrf.mxu0  ;;  %v1359_v50 = vpop.f32.mrf.mxu1 }
 0x429   :  { %v2426_v52 = vmul.f32 -1.442695, %v1362_v29  ;;  %v1363_v63 = vadd.f32 %v1288_v49, %v3850_v0  ;;  %v1365_v46 = vadd.f32 %v1359_v50, %v3851_v45 }
 0x42b   :  { %2500 = vpow2.f32 %v2426_v52  ;;  %v2427_v26 = vmul.f32 -1.442695, %v1363_v63  ;;  %v2428_v56 = vmul.f32 -1.442695, %v1365_v46  ;;  %v3859_v46 = vld [vmem:[#allocation27_spill] sm:$0xff] }
 0x42d   :  { %2502 = vpow2.f32 %v2427_v26 }
 0x42e   :  { %2504 = vtanh.f32 %v1364_v61  ;;  %v3858_v61 = vld [vmem:[#allocation26_spill] sm:$0xff] }
 0x42f   :  { %2506 = vpow2.f32 %v2428_v56  ;;  %v3855_v56 = vld [vmem:[#allocation23_spill] sm:$0xff] }
 0x438   :  { %v2501_v62 = vpop.eup %2500 }
 0x439   :  { %v1369_v3 = vadd.f32 1.0, %v2501_v62 }
 0x43a   :  { %v2503_v20 = vpop.eup %2502 }
 0x43b   :  { %2508 = vrcp.f32 %v1369_v3  ;;  %v1375_v51 = vadd.f32 1.0, %v2503_v20  ;;  %v2505_v29 = vpop.eup %2504  ;;  %v3854_v3 = vld [vmem:[#allocation22_spill] sm:$0xff]  ;;  %v3856_v20 = vld [vmem:[#allocation24_spill] sm:$0xff] }
 0x43c   :  { %v2507_v47 = vpop.eup %2506 }
 0x43d   :  { %2510 = vrcp.f32 %v1375_v51  ;;  %v1382_v0 = vadd.f32 1.0, %v2507_v47  ;;  %v3860_v51 = vld [vmem:[#allocation28_spill] sm:$0xff]  ;;  %v3862_v47 = vld [vmem:[#allocation30_spill] sm:$0xff] }
 0x43f   :  { %2512 = vrcp.f32 %v1382_v0  ;;  %v3866_v0 = vld [vmem:[#allocation34_spill] sm:$0xff] }
 0x448   :  { %v2509_v52 = vpop.eup %2508 }
 0x449   :  { %v1386_v49 = vmul.f32 %v2509_v52, %v2505_v29  ;;  %v3861_v29 = vld [vmem:[#allocation29_spill] sm:$0xff]  ;;  %v3863_v52 = vld [vmem:[#allocation31_spill] sm:$0xff] }
 0x44a   :  { %v2511_v63 = vpop.eup %2510 }
 0x44b   :  { %v1385_v26 = vmul.f32 %v2511_v63, %v3413_v48  ;;  %v3853_v48 = vld [vmem:[#allocation21_spill] sm:$0xff] }
 0x44c   :  { %v2513_v44 = vpop.eup %2512  ;;  %v3865_v63 = vld [vmem:[#allocation33_spill] sm:$0xff] }
 0x44d   :  { %v3487_v45 = vadd.f32 %v1386_v49, %v1385_v26  ;;  %v3864_v49 = vld [vmem:[#allocation32_spill] sm:$0xff]  ;;  %v3867_v26 = vld [vmem:[#allocation35_spill] sm:$0xff] }
 0x44f   :  { %2514 = vtanh.f32 %v3487_v45 }
 0x45c   :  { %v2515_v50 = vpop.eup %2514 }
 0x45d   :  { %v1389_v62 = vmul.f32 %v2515_v50, %v2513_v44  ;;  %v3868_v44 = vld [vmem:[#allocation36_spill] sm:$0xff]  ;;  %v3869_v50 = vmov 0.0  }
 0x45f   :  { %1392 = vst [vmem:[#allocation11 + $0x18] sm:$0xff] %v1389_v62  ;;  %1528 = vmatmul.mubr.f32.vlgmr.msra.gmra.mxu0 %v1389_v62  ;;  %1599 = vmatmul.mubr.f32.vlgmr.msra.gmra.mxu1 %v1389_v62  ;;  %v3870_v62 = vld [vmem:[#allocation37_spill] sm:$0xff] }
 0x460   :  { %1707 = vmatpush1.msra.mxu0 %v3220_v59  ;;  %1778 = vmatpush1.msra.mxu1 %v3222_v58 }
 0x461   :  { %1708 = vmatprep.subr.mxu0 %v3226_v53  ;;  %1779 = vmatprep.subr.mxu1 %v3228_v57 }
 0x462   :  { %1709 = vmatpush1.msra.mxu0 %v3232_v55  ;;  %1780 = vmatpush1.msra.mxu1 %v3234_v60 }
 0x463   :  { %1710 = vmatprep.subr.mxu0 %v3238_v1  ;;  %1781 = vmatprep.subr.mxu1 %v3240_v2 }
 0x464   :  { %1711 = vmatpush1.msra.mxu0 %v3244_v54  ;;  %1782 = vmatpush1.msra.mxu1 %v3246_v38 }
 0x465   :  { %1712 = vmatprep.subr.mxu0 %v3250_v4  ;;  %1783 = vmatprep.subr.mxu1 %v3252_v5 }
 0x466   :  { %1713 = vmatpush1.msra.mxu0 %v3256_v6  ;;  %1784 = vmatpush1.msra.mxu1 %v3258_v7 }
 0x467   :  { %1714 = vmatprep.subr.mxu0 %v3262_v8  ;;  %1785 = vmatprep.subr.mxu1 %v3264_v9 }
 0x468   :  { %1715 = vmatpush1.msra.mxu0 %v3268_v10  ;;  %1786 = vmatpush1.msra.mxu1 %v3270_v12 }
 0x469   :  { %1716 = vmatprep.subr.mxu0 %v3274_v13  ;;  %1787 = vmatprep.subr.mxu1 %v3276_v14 }
 0x46a   :  { %1717 = vmatpush1.msra.mxu0 %v3280_v15  ;;  %1788 = vmatpush1.msra.mxu1 %v3282_v16 }
 0x46b   :  { %1718 = vmatprep.subr.mxu0 %v3286_v17  ;;  %1789 = vmatprep.subr.mxu1 %v3288_v18 }
 0x46c   :  { %1719 = vmatpush1.msra.mxu0 %v3292_v19  ;;  %1790 = vmatpush1.msra.mxu1 %v3294_v21 }
 0x46d   :  { %1720 = vmatprep.subr.mxu0 %v3298_v22  ;;  %1791 = vmatprep.subr.mxu1 %v3300_v23 }
 0x46e   :  { %1721 = vmatpush1.msra.mxu0 %v3302_v24  ;;  %1792 = vmatpush1.msra.mxu1 %v3306_v25 }
 0x46f   :  { %1722 = vmatprep.subr.mxu0 %v3308_v27  ;;  %1793 = vmatprep.subr.mxu1 %v3310_v28 }
 0x470   :  { %1723 = vmatpush1.msra.mxu0 %v3314_v30  ;;  %1794 = vmatpush1.msra.mxu1 %v3316_v31 }
 0x471   :  { %1724 = vmatprep.subr.mxu0 %v3318_v32  ;;  %1795 = vmatprep.subr.mxu1 %v3322_v33 }
 0x472   :  { %1725 = vmatpush1.msra.mxu0 %v3324_v34  ;;  %1796 = vmatpush1.msra.mxu1 %v3326_v35 }
 0x473   :  { %1726 = vmatprep.subr.mxu0 %v3330_v36  ;;  %1797 = vmatprep.subr.mxu1 %v3332_v37 }
 0x474   :  { %1727 = vmatpush1.msra.mxu0 %v3336_v39  ;;  %1798 = vmatpush1.msra.mxu1 %v3338_v40 }
 0x475   :  { %1728 = vmatprep.subr.mxu0 %v3342_v41  ;;  %1799 = vmatprep.subr.mxu1 %v3344_v42 }
 0x476   :  { %1729 = vmatpush1.msra.mxu0 %v3348_v43  ;;  %1800 = vmatpush1.msra.mxu1 %v3853_v48 }
 0x477   :  { %1730 = vmatprep.subr.mxu0 %v3854_v3  ;;  %1801 = vmatprep.subr.mxu1 %v3855_v56  ;;  %v3876_v56 = vld [vmem:[#allocation52_spill] sm:$0xff] }
 0x478   :  { %1731 = vmatpush1.msra.mxu0 %v3856_v20  ;;  %1802 = vmatpush1.msra.mxu1 %v3857_v11  ;;  %v3875_v20 = vld [vmem:[#allocation54_spill] sm:$0xff] }
 0x479   :  { %1732 = vmatprep.subr.mxu0 %v3858_v61  ;;  %1803 = vmatprep.subr.mxu1 %v3859_v46 }
 0x47a   :  { %1733 = vmatpush1.msra.mxu0 %v3860_v51  ;;  %1804 = vmatpush1.msra.mxu1 %v3861_v29  ;;  %v3871_v29 = vld [vmem:[#allocation19_spill] sm:$0xff] }
 0x47b   :  { %1734 = vmatprep.subr.mxu0 %v3862_v47  ;;  %1805 = vmatprep.subr.mxu1 %v3863_v52  ;;  %v3872_v47 = vld [vmem:[#allocation20_spill] sm:$0xff] }
 0x47c   :  { %1735 = vmatpush1.msra.mxu0 %v3864_v49  ;;  %1806 = vmatpush1.msra.mxu1 %v3865_v63  ;;  %v3873_v49 = vld [vmem:[#allocation51_spill] sm:$0xff] }
 0x47d   :  { %1736 = vmatprep.subr.mxu0 %v3866_v0  ;;  %1807 = vmatprep.subr.mxu1 %v3867_v26  ;;  %v3874_v0 = vld [vmem:[#allocation53_spill] sm:$0xff] }
 0x47e   :  { %1737 = vmatpush1.msra.mxu0 %v3868_v44  ;;  %1770 = vmatprep.mubr.f32.mxu0 %v3869_v50 }
 0x47f   :  { %1808 = vmatpush1.msra.mxu1 %v3870_v62  ;;  %1841 = vmatprep.mubr.f32.mxu1 %v3869_v50 }
 0x480   :  { %1949 = vmatprep.subr.mxu0 %v3871_v29  ;;  %2020 = vmatprep.subr.mxu1 %v3872_v47 }
 0x51f   :  { %v1529_v52 = vpop.f32.mrf.mxu0  ;;  %v1600_v26 = vpop.f32.mrf.mxu1 }
 0x520   :  { %v1605_v51 = vadd.f32 %v1529_v52, %v3873_v49  ;;  %v1607_v50 = vadd.f32 %v1600_v26, %v3876_v56 }
 0x521   :  { %v1531_v63 = vpop.f32.mrf.mxu0  ;;  %v1602_v11 = vpop.f32.mrf.mxu1 }
 0x522   :  { %v2429_v46 = vmul.f32 -1.442695, %v1605_v51  ;;  %v1606_v61 = vadd.f32 %v1531_v63, %v3874_v0  ;;  %v1608_v62 = vadd.f32 %v1602_v11, %v3875_v20 }
 0x524   :  { %2516 = vpow2.f32 %v2429_v46  ;;  %v2430_v44 = vmul.f32 -1.442695, %v1606_v61  ;;  %v2431_v3 = vmul.f32 -1.442695, %v1608_v62  ;;  %v2191_v62 = vld [vmem:[#allocation10 + $0x1f8] sm:$0xff] }
 0x526   :  { %2518 = vpow2.f32 %v2430_v44 }
 0x527   :  { %2520 = vtanh.f32 %v1607_v50  ;;  %v2189_v50 = vld [vmem:[#allocation10 + $0x1e8] sm:$0xff] }
 0x528   :  { %2522 = vpow2.f32 %v2431_v3 }
 0x531   :  { %v2517_v29 = vpop.eup %2516 }
 0x532   :  { %v1612_v48 = vadd.f32 1.0, %v2517_v29  ;;  %v2188_v29 = vld [vmem:[#allocation10 + $0x1e0] sm:$0xff] }
 0x533   :  { %v2519_v47 = vpop.eup %2518 }
 0x534   :  { %2524 = vrcp.f32 %v1612_v48  ;;  %v1618_v52 = vadd.f32 1.0, %v2519_v47  ;;  %v2521_v51 = vpop.eup %2520  ;;  %v2190_v47 = vld [vmem:[#allocation10 + $0x1f0] sm:$0xff] }
 0x535   :  { %v2523_v49 = vpop.eup %2522 }
 0x536   :  { %2526 = vrcp.f32 %v1618_v52  ;;  %v1625_v0 = vadd.f32 1.0, %v2523_v49  ;;  %v2185_v52 = vld [vmem:[#allocation10 + $0x1c8] sm:$0xff]  ;;  %v2184_v49 = vld [vmem:[#allocation10 + $0x1c0] sm:$0xff] }
 0x538   :  { %2528 = vrcp.f32 %v1625_v0  ;;  %v2180_v0 = vld [vmem:[#allocation10 + $0x1a0] sm:$0xff] }
 0x541   :  { %v2525_v46 = vpop.eup %2524 }
 0x542   :  { %v1629_v63 = vmul.f32 %v2525_v46, %v2521_v51  ;;  %v2187_v51 = vld [vmem:[#allocation10 + $0x1d8] sm:$0xff]  ;;  %v2186_v46 = vld [vmem:[#allocation10 + $0x1d0] sm:$0xff] }
 0x543   :  { %v2527_v61 = vpop.eup %2526 }
 0x544   :  { %v1628_v44 = vmul.f32 %v2527_v61, %v3487_v45  ;;  %v2183_v61 = vld [vmem:[#allocation10 + $0x1b8] sm:$0xff] }
 0x545   :  { %v2529_v56 = vpop.eup %2528 }
 0x546   :  { %v3561_v20 = vadd.f32 %v1629_v63, %v1628_v44  ;;  %v2181_v63 = vld [vmem:[#allocation10 + $0x1a8] sm:$0xff]  ;;  %v2182_v44 = vld [vmem:[#allocation10 + $0x1b0] sm:$0xff] }
 0x548   :  { %2530 = vtanh.f32 %v3561_v20 }
 0x555   :  { %v2531_v11 = vpop.eup %2530 }
 0x556   :  { %v1632_v26 = vmul.f32 %v2531_v11, %v2529_v56  ;;  %v2179_v56 = vld [vmem:[#allocation10 + $0x198] sm:$0xff]  ;;  %v2176_v11 = vld [vmem:[#allocation10 + $0x180] sm:$0xff] }
 0x558   :  { %1635 = vst [vmem:[#allocation11 + $0x20] sm:$0xff] %v1632_v26  ;;  %1771 = vmatmul.mubr.f32.vlgmr.msra.gmra.mxu0 %v1632_v26  ;;  %1842 = vmatmul.mubr.f32.vlgmr.msra.gmra.mxu1 %v1632_v26  ;;  %v2178_v26 = vld [vmem:[#allocation10 + $0x190] sm:$0xff] }
 0x559   :  { %1950 = vmatpush1.msra.mxu0 %v3220_v59  ;;  %2021 = vmatpush1.msra.mxu1 %v3222_v58  ;;  %v3877_v59 = vld [vmem:[#allocation21_spill] sm:$0xff]  ;;  %v3878_v58 = vld [vmem:[#allocation22_spill] sm:$0xff] }
 0x55a   :  { %1951 = vmatprep.subr.mxu0 %v3226_v53  ;;  %2022 = vmatprep.subr.mxu1 %v3228_v57  ;;  %v3879_v53 = vld [vmem:[#allocation23_spill] sm:$0xff]  ;;  %v3880_v57 = vld [vmem:[#allocation24_spill] sm:$0xff] }
 0x55b   :  { %1952 = vmatpush1.msra.mxu0 %v3232_v55  ;;  %2023 = vmatpush1.msra.mxu1 %v3234_v60  ;;  %v3881_v55 = vld [vmem:[#allocation25_spill] sm:$0xff]  ;;  %v3882_v60 = vld [vmem:[#allocation26_spill] sm:$0xff] }
 0x55c   :  { %1953 = vmatprep.subr.mxu0 %v3238_v1  ;;  %2024 = vmatprep.subr.mxu1 %v3240_v2  ;;  %v3883_v1 = vld [vmem:[#allocation27_spill] sm:$0xff]  ;;  %v3884_v2 = vld [vmem:[#allocation28_spill] sm:$0xff] }
 0x55d   :  { %1954 = vmatpush1.msra.mxu0 %v3244_v54  ;;  %2025 = vmatpush1.msra.mxu1 %v3246_v38  ;;  %v3885_v54 = vld [vmem:[#allocation29_spill] sm:$0xff]  ;;  %v3886_v38 = vld [vmem:[#allocation30_spill] sm:$0xff] }
 0x55e   :  { %1955 = vmatprep.subr.mxu0 %v3250_v4  ;;  %2026 = vmatprep.subr.mxu1 %v3252_v5  ;;  %v3887_v4 = vld [vmem:[#allocation31_spill] sm:$0xff]  ;;  %v3888_v5 = vld [vmem:[#allocation32_spill] sm:$0xff] }
 0x55f   :  { %1956 = vmatpush1.msra.mxu0 %v3256_v6  ;;  %2027 = vmatpush1.msra.mxu1 %v3258_v7  ;;  %v3889_v6 = vld [vmem:[#allocation33_spill] sm:$0xff]  ;;  %v3890_v7 = vld [vmem:[#allocation34_spill] sm:$0xff] }
 0x560   :  { %1957 = vmatprep.subr.mxu0 %v3262_v8  ;;  %2028 = vmatprep.subr.mxu1 %v3264_v9  ;;  %v3891_v8 = vld [vmem:[#allocation35_spill] sm:$0xff]  ;;  %v3892_v9 = vld [vmem:[#allocation36_spill] sm:$0xff] }
 0x561   :  { %1958 = vmatpush1.msra.mxu0 %v3268_v10  ;;  %2029 = vmatpush1.msra.mxu1 %v3270_v12  ;;  %v3893_v10 = vmov 0.0   ;;  %v3894_v12 = vld [vmem:[#allocation37_spill] sm:$0xff] }
 0x562   :  { %1959 = vmatprep.subr.mxu0 %v3274_v13  ;;  %2030 = vmatprep.subr.mxu1 %v3276_v14  ;;  %v3895_v14 = vld [vmem:[#allocation55_spill] sm:$0xff] }
 0x563   :  { %1960 = vmatpush1.msra.mxu0 %v3280_v15  ;;  %2031 = vmatpush1.msra.mxu1 %v3282_v16 }
 0x564   :  { %1961 = vmatprep.subr.mxu0 %v3286_v17  ;;  %2032 = vmatprep.subr.mxu1 %v3288_v18  ;;  %v3896_v18 = vld [vmem:[#allocation57_spill] sm:$0xff] }
 0x565   :  { %1962 = vmatpush1.msra.mxu0 %v3292_v19  ;;  %2033 = vmatpush1.msra.mxu1 %v3294_v21 }
 0x566   :  { %1963 = vmatprep.subr.mxu0 %v3298_v22  ;;  %2034 = vmatprep.subr.mxu1 %v3300_v23 }
 0x567   :  { %1964 = vmatpush1.msra.mxu0 %v3302_v24  ;;  %2035 = vmatpush1.msra.mxu1 %v3306_v25  ;;  %v3897_v24 = vld [vmem:[#allocation58_spill] sm:$0xff] }
 0x568   :  { %1965 = vmatprep.subr.mxu0 %v3308_v27  ;;  %2036 = vmatprep.subr.mxu1 %v3310_v28  ;;  %v3898_v27 = vld [vmem:[#allocation56_spill] sm:$0xff] }
 0x569   :  { %1966 = vmatpush1.msra.mxu0 %v3314_v30  ;;  %2037 = vmatpush1.msra.mxu1 %v3316_v31 }
 0x56a   :  { %1967 = vmatprep.subr.mxu0 %v3318_v32  ;;  %2038 = vmatprep.subr.mxu1 %v3322_v33 }
 0x56b   :  { %1968 = vmatpush1.msra.mxu0 %v3324_v34  ;;  %2039 = vmatpush1.msra.mxu1 %v3326_v35 }
 0x56c   :  { %1969 = vmatprep.subr.mxu0 %v3330_v36  ;;  %2040 = vmatprep.subr.mxu1 %v3332_v37 }
 0x56d   :  { %1970 = vmatpush1.msra.mxu0 %v3336_v39  ;;  %2041 = vmatpush1.msra.mxu1 %v3338_v40 }
 0x56e   :  { %1971 = vmatprep.subr.mxu0 %v3342_v41  ;;  %2042 = vmatprep.subr.mxu1 %v3344_v42 }
 0x56f   :  { %1972 = vmatpush1.msra.mxu0 %v3348_v43  ;;  %2043 = vmatpush1.msra.mxu1 %v3877_v59  ;;  %v2173_v59 = vld [vmem:[#allocation10 + $0x168] sm:$0xff] }
 0x570   :  { %1973 = vmatprep.subr.mxu0 %v3878_v58  ;;  %2044 = vmatprep.subr.mxu1 %v3879_v53  ;;  %v2175_v58 = vld [vmem:[#allocation10 + $0x178] sm:$0xff]  ;;  %v2172_v53 = vld [vmem:[#allocation10 + $0x160] sm:$0xff] }
 0x571   :  { %1974 = vmatpush1.msra.mxu0 %v3880_v57  ;;  %2045 = vmatpush1.msra.mxu1 %v3881_v55  ;;  %v2174_v57 = vld [vmem:[#allocation10 + $0x170] sm:$0xff]  ;;  %v2169_v55 = vld [vmem:[#allocation10 + $0x148] sm:$0xff] }
 0x572   :  { %1975 = vmatprep.subr.mxu0 %v3882_v60  ;;  %2046 = vmatprep.subr.mxu1 %v3883_v1  ;;  %v2171_v60 = vld [vmem:[#allocation10 + $0x158] sm:$0xff]  ;;  %v2168_v1 = vld [vmem:[#allocation10 + $0x140] sm:$0xff] }
 0x573   :  { %1976 = vmatpush1.msra.mxu0 %v3884_v2  ;;  %2047 = vmatpush1.msra.mxu1 %v3885_v54  ;;  %v2170_v2 = vld [vmem:[#allocation10 + $0x150] sm:$0xff]  ;;  %v2165_v54 = vld [vmem:[#allocation10 + $0x128] sm:$0xff] }
 0x574   :  { %1977 = vmatprep.subr.mxu0 %v3886_v38  ;;  %2048 = vmatprep.subr.mxu1 %v3887_v4  ;;  %v2167_v38 = vld [vmem:[#allocation10 + $0x138] sm:$0xff]  ;;  %v2164_v4 = vld [vmem:[#allocation10 + $0x120] sm:$0xff] }
 0x575   :  { %1978 = vmatpush1.msra.mxu0 %v3888_v5  ;;  %2049 = vmatpush1.msra.mxu1 %v3889_v6  ;;  %v2166_v5 = vld [vmem:[#allocation10 + $0x130] sm:$0xff]  ;;  %v2161_v6 = vld [vmem:[#allocation10 + $0x108] sm:$0xff] }
 0x576   :  { %1979 = vmatprep.subr.mxu0 %v3890_v7  ;;  %2050 = vmatprep.subr.mxu1 %v3891_v8  ;;  %v2163_v7 = vld [vmem:[#allocation10 + $0x118] sm:$0xff]  ;;  %v2160_v8 = vld [vmem:[#allocation10 + $0x100] sm:$0xff] }
 0x577   :  { %1980 = vmatpush1.msra.mxu0 %v3892_v9  ;;  %2013 = vmatprep.mubr.f32.mxu0 %v3893_v10  ;;  %v2162_v9 = vld [vmem:[#allocation10 + $0x110] sm:$0xff] }
 0x578   :  { %2051 = vmatpush1.msra.mxu1 %v3894_v12  ;;  %2084 = vmatprep.mubr.f32.mxu1 %v3893_v10  ;;  %v2159_v12 = vld [vmem:[#allocation10 + $0xf8] sm:$0xff] }
 0x579   :  { %2192 = vmatprep.subr.mxu0 %v2189_v50  ;;  %2263 = vmatprep.subr.mxu1 %v2191_v62  ;;  %v2130_v50 = vld [vmem:[#allocation10 + $0x10] sm:$0xff] }
 0x618   :  { %v1772_v13 = vpop.f32.mrf.mxu0  ;;  %v1843_v21 = vpop.f32.mrf.mxu1 }
 0x619   :  { %v1848_v15 = vadd.f32 %v1772_v13, %v3895_v14  ;;  %v1850_v28 = vadd.f32 %v1843_v21, %v3898_v27  ;;  %v2156_v13 = vld [vmem:[#allocation10 + $0xe0] sm:$0xff]  ;;  %v2158_v14 = vld [vmem:[#allocation10 + $0xf0] sm:$0xff]  ;;  %v2151_v21 = vld [vmem:[#allocation10 + $0xb8] sm:$0xff] }
 0x61a   :  { %v1774_v16 = vpop.f32.mrf.mxu0  ;;  %v1845_v23 = vpop.f32.mrf.mxu1  ;;  %v2144_v27 = vld [vmem:[#allocation10 + $0x80] sm:$0xff] }
 0x61b   :  { %v2432_v17 = vmul.f32 -1.442695, %v1848_v15  ;;  %v1849_v19 = vadd.f32 %v1774_v16, %v3896_v18  ;;  %v1851_v25 = vadd.f32 %v1845_v23, %v3897_v24  ;;  %v2153_v15 = vld [vmem:[#allocation10 + $0xc8] sm:$0xff]  ;;  %v2155_v16 = vld [vmem:[#allocation10 + $0xd8] sm:$0xff]  ;;  %v2154_v18 = vld [vmem:[#allocation10 + $0xd0] sm:$0xff] }
 0x61c   :  { %v2150_v23 = vld [vmem:[#allocation10 + $0xb0] sm:$0xff]  ;;  %v2145_v24 = vld [vmem:[#allocation10 + $0x88] sm:$0xff] }
 0x61d   :  { %2532 = vpow2.f32 %v2432_v17  ;;  %v2433_v22 = vmul.f32 -1.442695, %v1849_v19  ;;  %v2434_v30 = vmul.f32 -1.442695, %v1851_v25  ;;  %v2152_v17 = vld [vmem:[#allocation10 + $0xc0] sm:$0xff]  ;;  %v2149_v19 = vld [vmem:[#allocation10 + $0xa8] sm:$0xff] }
 0x61e   :  { %v2147_v25 = vld [vmem:[#allocation10 + $0x98] sm:$0xff] }
 0x61f   :  { %2534 = vpow2.f32 %v2433_v22  ;;  %v2148_v22 = vld [vmem:[#allocation10 + $0xa0] sm:$0xff] }
 0x620   :  { %2536 = vtanh.f32 %v1850_v28  ;;  %v2146_v28 = vld [vmem:[#allocation10 + $0x90] sm:$0xff] }
 0x621   :  { %2538 = vpow2.f32 %v2434_v30  ;;  %v2141_v30 = vld [vmem:[#allocation10 + $0x68] sm:$0xff] }
 0x62a   :  { %v2533_v31 = vpop.eup %2532 }
 0x62b   :  { %v1855_v32 = vadd.f32 1.0, %v2533_v31  ;;  %v2143_v31 = vld [vmem:[#allocation10 + $0x78] sm:$0xff] }
 0x62c   :  { %v2535_v33 = vpop.eup %2534 }
 0x62d   :  { %2540 = vrcp.f32 %v1855_v32  ;;  %v1861_v34 = vadd.f32 1.0, %v2535_v33  ;;  %v2537_v35 = vpop.eup %2536  ;;  %v2140_v32 = vld [vmem:[#allocation10 + $0x60] sm:$0xff]  ;;  %v2142_v33 = vld [vmem:[#allocation10 + $0x70] sm:$0xff] }
 0x62e   :  { %v2539_v36 = vpop.eup %2538 }
 0x62f   :  { %2542 = vrcp.f32 %v1861_v34  ;;  %v1868_v41 = vadd.f32 1.0, %v2539_v36  ;;  %v2137_v34 = vld [vmem:[#allocation10 + $0x48] sm:$0xff]  ;;  %v2136_v36 = vld [vmem:[#allocation10 + $0x40] sm:$0xff] }
 0x631   :  { %2544 = vrcp.f32 %v1868_v41  ;;  %v2132_v41 = vld [vmem:[#allocation10 + $0x20] sm:$0xff] }
 0x63a   :  { %v2541_v37 = vpop.eup %2540 }
 0x63b   :  { %v1872_v39 = vmul.f32 %v2541_v37, %v2537_v35  ;;  %v2139_v35 = vld [vmem:[#allocation10 + $0x58] sm:$0xff]  ;;  %v2138_v37 = vld [vmem:[#allocation10 + $0x50] sm:$0xff] }
 0x63c   :  { %v2543_v40 = vpop.eup %2542 }
 0x63d   :  { %v1871_v42 = vmul.f32 %v2543_v40, %v3561_v20  ;;  %v2177_v20 = vld [vmem:[#allocation10 + $0x188] sm:$0xff]  ;;  %v2135_v40 = vld [vmem:[#allocation10 + $0x38] sm:$0xff] }
 0x63e   :  { %v2545_v45 = vpop.eup %2544 }
 0x63f   :  { %v3633_v43 = vadd.f32 %v1872_v39, %v1871_v42  ;;  %v2133_v39 = vld [vmem:[#allocation10 + $0x28] sm:$0xff]  ;;  %v2134_v42 = vld [vmem:[#allocation10 + $0x30] sm:$0xff] }
 0x641   :  { %2546 = vtanh.f32 %v3633_v43 }
 0x64e   :  { %v2547_v48 = vpop.eup %2546 }
 0x64f   :  { %v1875_v3 = vmul.f32 %v2547_v48, %v2545_v45  ;;  %v2129_v45 = vld [vmem:[#allocation10 + $0x8] sm:$0xff]  ;;  %v2131_v48 = vld [vmem:[#allocation10 + $0x18] sm:$0xff] }
 0x651   :  { %1878 = vst [vmem:[#allocation11 + $0x28] sm:$0xff] %v1875_v3  ;;  %2014 = vmatmul.mubr.f32.vlgmr.msra.gmra.mxu0 %v1875_v3  ;;  %2085 = vmatmul.mubr.f32.vlgmr.msra.gmra.mxu1 %v1875_v3  ;;  %v2128_v3 = vld [vmem:[#allocation10] sm:$0xff] }
 0x652   :  { %2256 = vmatprep.mubr.f32.mxu0 %v3893_v10  ;;  %2327 = vmatprep.mubr.f32.mxu1 %v3893_v10  ;;  %v2157_v10 = vld [vmem:[#allocation10 + $0xe8] sm:$0xff] }
 0x653   :  { %2193 = vmatpush1.msra.mxu0 %v2188_v29  ;;  %2264 = vmatpush1.msra.mxu1 %v2190_v47  ;;  %v3899_v29 = vld [vmem:[#allocation59_spill] sm:$0xff] }
 0x654   :  { %2194 = vmatprep.subr.mxu0 %v2185_v52  ;;  %2265 = vmatprep.subr.mxu1 %v2187_v51 }
 0x655   :  { %2195 = vmatpush1.msra.mxu0 %v2184_v49  ;;  %2266 = vmatpush1.msra.mxu1 %v2186_v46  ;;  %v3900_v49 = vld [vmem:[#allocation61_spill] sm:$0xff] }
 0x656   :  { %2196 = vmatprep.subr.mxu0 %v2181_v63  ;;  %2267 = vmatprep.subr.mxu1 %v2183_v61 }
 0x657   :  { %2197 = vmatpush1.msra.mxu0 %v2180_v0  ;;  %2268 = vmatpush1.msra.mxu1 %v2182_v44  ;;  %v3901_v44 = vld [vmem:[#allocation62_spill] sm:$0xff] }
 0x658   :  { %2198 = vmatprep.subr.mxu0 %v2177_v20  ;;  %2269 = vmatprep.subr.mxu1 %v2179_v56  ;;  %v3902_v56 = vld [vmem:[#allocation60_spill] sm:$0xff] }
 0x659   :  { %2199 = vmatpush1.msra.mxu0 %v2176_v11  ;;  %2270 = vmatpush1.msra.mxu1 %v2178_v26 }
 0x65a   :  { %2200 = vmatprep.subr.mxu0 %v2173_v59  ;;  %2271 = vmatprep.subr.mxu1 %v2175_v58 }
 0x65b   :  { %2201 = vmatpush1.msra.mxu0 %v2172_v53  ;;  %2272 = vmatpush1.msra.mxu1 %v2174_v57 }
 0x65c   :  { %2202 = vmatprep.subr.mxu0 %v2169_v55  ;;  %2273 = vmatprep.subr.mxu1 %v2171_v60 }
 0x65d   :  { %2203 = vmatpush1.msra.mxu0 %v2168_v1  ;;  %2274 = vmatpush1.msra.mxu1 %v2170_v2 }
 0x65e   :  { %2204 = vmatprep.subr.mxu0 %v2165_v54  ;;  %2275 = vmatprep.subr.mxu1 %v2167_v38 }
 0x65f   :  { %2205 = vmatpush1.msra.mxu0 %v2164_v4  ;;  %2276 = vmatpush1.msra.mxu1 %v2166_v5 }
 0x660   :  { %2206 = vmatprep.subr.mxu0 %v2161_v6  ;;  %2277 = vmatprep.subr.mxu1 %v2163_v7 }
 0x661   :  { %2207 = vmatpush1.msra.mxu0 %v2160_v8  ;;  %2278 = vmatpush1.msra.mxu1 %v2162_v9 }
 0x662   :  { %2208 = vmatprep.subr.mxu0 %v2157_v10  ;;  %2279 = vmatprep.subr.mxu1 %v2159_v12  ;;  %v3903_v10 = vld [vmem:[#allocation63_spill] sm:$0xff] }
 0x663   :  { %2209 = vmatpush1.msra.mxu0 %v2156_v13  ;;  %2280 = vmatpush1.msra.mxu1 %v2158_v14 }
 0x664   :  { %2210 = vmatprep.subr.mxu0 %v2153_v15  ;;  %2281 = vmatprep.subr.mxu1 %v2155_v16  ;;  %v3904_v15 = vld [vmem:[#allocation65_spill] sm:$0xff] }
 0x665   :  { %2211 = vmatpush1.msra.mxu0 %v2152_v17  ;;  %2282 = vmatpush1.msra.mxu1 %v2154_v18 }
 0x666   :  { %2212 = vmatprep.subr.mxu0 %v2149_v19  ;;  %2283 = vmatprep.subr.mxu1 %v2151_v21  ;;  %v3905_v19 = vld [vmem:[#allocation66_spill] sm:$0xff] }
 0x667   :  { %2213 = vmatpush1.msra.mxu0 %v2148_v22  ;;  %2284 = vmatpush1.msra.mxu1 %v2150_v23  ;;  %v3906_v22 = vld [vmem:[#allocation64_spill] sm:$0xff] }
 0x668   :  { %2214 = vmatprep.subr.mxu0 %v2145_v24  ;;  %2285 = vmatprep.subr.mxu1 %v2147_v25 }
 0x669   :  { %2215 = vmatpush1.msra.mxu0 %v2144_v27  ;;  %2286 = vmatpush1.msra.mxu1 %v2146_v28 }
 0x66a   :  { %2216 = vmatprep.subr.mxu0 %v2141_v30  ;;  %2287 = vmatprep.subr.mxu1 %v2143_v31 }
 0x66b   :  { %2217 = vmatpush1.msra.mxu0 %v2140_v32  ;;  %2288 = vmatpush1.msra.mxu1 %v2142_v33 }
 0x66c   :  { %2218 = vmatprep.subr.mxu0 %v2137_v34  ;;  %2289 = vmatprep.subr.mxu1 %v2139_v35 }
 0x66d   :  { %2219 = vmatpush1.msra.mxu0 %v2136_v36  ;;  %2290 = vmatpush1.msra.mxu1 %v2138_v37 }
 0x66e   :  { %2220 = vmatprep.subr.mxu0 %v2133_v39  ;;  %2291 = vmatprep.subr.mxu1 %v2135_v40 }
 0x66f   :  { %2221 = vmatpush1.msra.mxu0 %v2132_v41  ;;  %2292 = vmatpush1.msra.mxu1 %v2134_v42 }
 0x670   :  { %2222 = vmatprep.subr.mxu0 %v2129_v45  ;;  %2293 = vmatprep.subr.mxu1 %v2131_v48 }
 0x671   :  { %2223 = vmatpush1.msra.mxu0 %v2128_v3  ;;  %2294 = vmatpush1.msra.mxu1 %v2130_v50 }
 0x711   :  { %v2015_v62 = vpop.f32.mrf.mxu0  ;;  %v2086_v63 = vpop.f32.mrf.mxu1 }
 0x712   :  { %v2091_v47 = vadd.f32 %v2015_v62, %v3899_v29  ;;  %v2093_v11 = vadd.f32 %v2086_v63, %v3902_v56 }
 0x713   :  { %v2017_v52 = vpop.f32.mrf.mxu0  ;;  %v2088_v0 = vpop.f32.mrf.mxu1 }
 0x714   :  { %v2435_v51 = vmul.f32 -1.442695, %v2091_v47  ;;  %v2092_v46 = vadd.f32 %v2017_v52, %v3900_v49  ;;  %v2094_v20 = vadd.f32 %v2088_v0, %v3901_v44 }
 0x716   :  { %2548 = vpow2.f32 %v2435_v51  ;;  %v2436_v61 = vmul.f32 -1.442695, %v2092_v46  ;;  %v2437_v26 = vmul.f32 -1.442695, %v2094_v20 }
 0x718   :  { %2550 = vpow2.f32 %v2436_v61 }
 0x719   :  { %2552 = vtanh.f32 %v2093_v11 }
 0x71a   :  { %2554 = vpow2.f32 %v2437_v26 }
 0x723   :  { %v2549_v59 = vpop.eup %2548 }
 0x724   :  { %v2098_v58 = vadd.f32 1.0, %v2549_v59 }
 0x725   :  { %v2551_v53 = vpop.eup %2550 }
 0x726   :  { %2556 = vrcp.f32 %v2098_v58  ;;  %v2104_v57 = vadd.f32 1.0, %v2551_v53  ;;  %v2553_v55 = vpop.eup %2552 }
 0x727   :  { %v2555_v60 = vpop.eup %2554 }
 0x728   :  { %2558 = vrcp.f32 %v2104_v57  ;;  %v2111_v38 = vadd.f32 1.0, %v2555_v60 }
 0x72a   :  { %2560 = vrcp.f32 %v2111_v38 }
 0x733   :  { %v2557_v1 = vpop.eup %2556 }
 0x734   :  { %v2115_v2 = vmul.f32 %v2557_v1, %v2553_v55 }
 0x735   :  { %v2559_v54 = vpop.eup %2558 }
 0x736   :  { %v2114_v4 = vmul.f32 %v2559_v54, %v3633_v43 }
 0x737   :  { %v2561_v6 = vpop.eup %2560 }
 0x738   :  { %v2116_v5 = vadd.f32 %v2115_v2, %v2114_v4 }
 0x73a   :  { %2562 = vtanh.f32 %v2116_v5 }
 0x747   :  { %v2563_v7 = vpop.eup %2562 }
 0x748   :  { %v2118_v8 = vmul.f32 %v2563_v7, %v2561_v6 }
 0x74a   :  { %2121 = vst [vmem:[#allocation11 + $0x30] sm:$0xff] %v2118_v8  ;;  %2257 = vmatmul.mubr.f32.vlgmr.msra.gmra.mxu0 %v2118_v8  ;;  %2328 = vmatmul.mubr.f32.vlgmr.msra.gmra.mxu1 %v2118_v8 }
 0x80a   :  { %v2258_v9 = vpop.f32.mrf.mxu0  ;;  %v2329_v17 = vpop.f32.mrf.mxu1 }
 0x80b   :  { %v2334_v12 = vadd.f32 %v2258_v9, %v3903_v10  ;;  %v2336_v23 = vadd.f32 %v2329_v17, %v3906_v22 }
 0x80c   :  { %v2260_v13 = vpop.f32.mrf.mxu0  ;;  %v2331_v43 = vpop.f32.mrf.mxu1 }
 0x80d   :  { %v2438_v14 = vmul.f32 -1.442695, %v2334_v12  ;;  %v2335_v16 = vadd.f32 %v2260_v13, %v3904_v15  ;;  %v2337_v21 = vadd.f32 %v2331_v43, %v3905_v19 }
 0x80f   :  { %2564 = vpow2.f32 %v2438_v14  ;;  %v2439_v18 = vmul.f32 -1.442695, %v2335_v16  ;;  %v2440_v24 = vmul.f32 -1.442695, %v2337_v21 }
 0x811   :  { %2566 = vpow2.f32 %v2439_v18 }
 0x812   :  { %2568 = vtanh.f32 %v2336_v23 }
 0x813   :  { %2570 = vpow2.f32 %v2440_v24 }
 0x81c   :  { %v2565_v25 = vpop.eup %2564 }
 0x81d   :  { %v2341_v27 = vadd.f32 1.0, %v2565_v25 }
 0x81e   :  { %v2567_v28 = vpop.eup %2566 }
 0x81f   :  { %2572 = vrcp.f32 %v2341_v27  ;;  %v2347_v30 = vadd.f32 1.0, %v2567_v28  ;;  %v2569_v31 = vpop.eup %2568 }
 0x820   :  { %v2571_v32 = vpop.eup %2570 }
 0x821   :  { %2574 = vrcp.f32 %v2347_v30  ;;  %v2354_v36 = vadd.f32 1.0, %v2571_v32 }
 0x823   :  { %2576 = vrcp.f32 %v2354_v36 }
 0x82c   :  { %v2573_v33 = vpop.eup %2572 }
 0x82d   :  { %v2358_v34 = vmul.f32 %v2573_v33, %v2569_v31 }
 0x82e   :  { %v2575_v35 = vpop.eup %2574 }
 0x82f   :  { %v2357_v37 = vmul.f32 %v2575_v35, %v2116_v5 }
 0x830   :  { %v2577_v40 = vpop.eup %2576 }
 0x831   :  { %v2359_v39 = vadd.f32 %v2358_v34, %v2357_v37 }
 0x833   :  { %2578 = vtanh.f32 %v2359_v39  ;;  %2371 = vst [vmem:[#allocation14] sm:$0xff] %v2359_v39 }
 0x840   :  { %v2579_v41 = vpop.eup %2578 }
 0x841   :  { %v2361_v42 = vmul.f32 %v2579_v41, %v2577_v40 }
 0x843   :  { %2364 = vst [vmem:[#allocation11 + $0x38] sm:$0xff] %v2361_v42  ;;  %2369 = vst [vmem:[#allocation12] sm:$0xff] %v2361_v42 }
 0x844   :  { %2651 = shalt.err (!%p2648_p5)
}
 0x845   :  { %2393 = dma.vmem_to_hbm [thread:$0]  %s2391_s15, 128, %s3664_s5, [#allocation13]  }
 0x846   :  { %s2660_s23 = scalar_lea.vmem %s2378_s17, 1024  ;;  %p2665_p7 = scmp.lt.s32.totalorder %s2378_s17, %s2378_s17 }
 0x847   :  { %p2661_p6 = scmp.ne.s32.totalorder %s2378_s17, %s2660_s23  ;;  %p2666_p8 = scmp.lt.s32.totalorder %s2660_s23, %s2660_s23 }
 0x849   :  { %p2667_p9 = por %p2666_p8, %p2665_p7 }
 0x84b   :  { %p2668_p10 = pnand %p2667_p9, %p2661_p6 }
 0x84d   :  { %2671 = shalt.err (!%p2668_p10)
}
 0x84e   :  { %2383 = dma.vmem_to_hbm [thread:$0]  %s2378_s17, 1024, %s3663_s4, [#allocation7], %s2712_s7, %s2712_s7, %s2713_s8  }
 0x84f   :  { %s2680_s26 = scalar_lea.vmem %s2401_s19, 128  ;;  %p2685_p12 = scmp.lt.s32.totalorder %s2401_s19, %s2401_s19 }
 0x850   :  { %p2681_p11 = scmp.ne.s32.totalorder %s2401_s19, %s2680_s26  ;;  %p2686_p13 = scmp.lt.s32.totalorder %s2680_s26, %s2680_s26 }
 0x852   :  { %p2687_p0 = por %p2686_p13, %p2685_p12 }
 0x854   :  { %p2688_p1 = pnand %p2687_p0, %p2681_p11 }
 0x856   :  { %2691 = shalt.err (!%p2688_p1)
}
 0x857   :  { %2403 = dma.vmem_to_hbm [thread:$0]  %s2401_s19, 128, %s3665_s6, [#allocation13]  }
 0x858   :  { %2704 = dma.done.wait [#allocation7], 1024  }
 0x859   :  { %2705 = vsyncadd [#allocation7], 4294966272 }
 0x85a   :  { %2706 = dma.done.wait [#allocation13], 256  }
 0x85b   :  { %2707 = vsyncadd [#allocation13], 4294967040 }
 0x85c   :  { %2413 = vsyncpa [#allocation6], 1 }
 0x85d   :  { %2414 = vsyncpa [#allocation9], 1 }
 0x85e   :  { %2415 = vsyncpa [#allocation7], 1 }
 0x85f   :  { %2416 = vsyncpa [#allocation13], 1 }

</bundles_post_ra>
